<compile_context>
chip_gen: v7x
topology: tpu7x:2x2x1
jax: 0.10.0
libtpu: 0.0.40
codegen_flags: <defaults>
</compile_context>

<pallas_src>
import functools

import jax
import jax.numpy as jnp
from jax.experimental import pallas as pl
from jax.experimental.pallas import tpu as pltpu


# ---------------------------------------------------------------- tiling ----
def _round_up(x, m):
    return (x + m - 1) // m * m


def _vmem_block_bytes(leading, sublane, lane, dtype):
    """VMEM bytes of one buffer, with (sublane-pack, 128-lane) padding."""
    itemsize = jnp.dtype(dtype).itemsize
    sub_pack = 8 * max(4 // itemsize, 1)  # 8 rows f32, 16 bf16, 32 int8
    return (leading
            * _round_up(max(sublane, 1), sub_pack)
            * _round_up(max(lane, 1), 128)
            * itemsize)


def _choose_row_tile(n, c_in, c_out, r, h, w, in_dtype, out_dtype,
                     budget_bytes=20 * 1024 * 1024, min_steps=4,
                     max_unrolled_rows=128):
    """Input-image rows per grid step (tk).

    Constraints: tk divides H; unless tk == H, tk*W % 128 == 0 and tk*r % 8 == 0
    (so all BlockSpecs obey the (8, 128) rule with no ragged blocks); the
    double-buffered working set (sublane/lane padded) fits `budget_bytes`; and
    we prefer >= `min_steps` total grid steps so the DMA pipeline overlaps and
    both v7x TensorCores get work.
    """
    cr2 = c_out * r * r

    def working_set(tk):
        x_blk = _vmem_block_bytes(1, c_in, tk * w, in_dtype)
        o_blk = _vmem_block_bytes(c_out, tk * r, w * r, out_dtype)
        w_blk = _vmem_block_bytes(1, cr2, c_in, in_dtype)
        b_blk = _vmem_block_bytes(1, cr2, 1, in_dtype)
        acc = _vmem_block_bytes(1, cr2, tk * w, jnp.float32)
        return 2 * (x_blk + o_blk + w_blk + b_blk) + acc  # 2x = double buffering

    def ok(tk):
        if h % tk:
            return False
        if tk != h and ((tk * w) % 128 or (tk * r) % 8):
            return False
        return working_set(tk) <= budget_bytes and tk <= max_unrolled_rows

    cands = [tk for tk in range(1, h + 1) if ok(tk)]
    if not cands:                       # last resort: whole image per step
        cands = [h]
    preferred = [tk for tk in cands if n * (h // tk) >= min_steps]
    return max(preferred) if preferred else max(cands)


# ---------------------------------------------------------------- kernels ---
def _fused_conv_pixel_shuffle_kernel(x_ref, w_ref, b_ref, o_ref, acc_ref,
                                     *, c_out, r, w_img, tk):
    """One grid step: tk input rows of one batch element.

    x_ref:   (C_in, tk*W)        input rows, lane-dense
    w_ref:   (Cr2, C_in)         1x1-conv weight, rows reordered phase-major
    b_ref:   (Cr2, 1)            bias, same ordering
    o_ref:   (C_out, tk*r, W*r)  final (pixel-shuffled) output rows
    acc_ref: (Cr2, tk*W) f32     conv-result scratch
    """
    # ---- 1x1 conv: one lane-dense GEMM, f32 accumulation, bias in f32. ----
    acc_ref[...] = (
        jnp.dot(w_ref[...], x_ref[...], preferred_element_type=jnp.float32)
        + b_ref[...].astype(jnp.float32)
    )

    # ---- PixelShuffle, fused on-chip. ----
    # dil_j is a (W, W*r) 0/1 matrix that places source column w at column
    # w*r + j, so a tiny MXU matmul does the stride-r lane interleave exactly
    # (each output column has a single 0/1 source -> bit-exact).
    wr = w_img * r
    src = jax.lax.broadcasted_iota(jnp.int32, (w_img, wr), 0)
    dst = jax.lax.broadcasted_iota(jnp.int32, (w_img, wr), 1)
    dils = [(dst == src * r + j).astype(jnp.float32) for j in range(r)]

    for h in range(tk):                       # static unroll (tk kept small)
        col0 = h * w_img
        for i in range(r):                    # output row-phase
            out_row = None
            for j in range(r):                # output column-phase
                p = i * r + j                 # phase-major row group of acc
                slab = acc_ref[p * c_out:(p + 1) * c_out, col0:col0 + w_img]
                part = jnp.dot(slab, dils[j], preferred_element_type=jnp.float32)
                out_row = part if out_row is None else out_row + part
            # out[n, c, (h0+h)*r + i, w*r + j] = conv[n, c*r^2+i*r+j, h0+h, w]
            o_ref[:, h * r + i, :] = out_row.astype(o_ref.dtype)


def _conv1x1_kernel(x_ref, w_ref, b_ref, o_ref):
    # Unfused fallback: plain transposed 1x1-conv GEMM (known-good path).
    acc = jnp.dot(w_ref[...], x_ref[...], preferred_element_type=jnp.float32)
    o_ref[...] = (acc + b_ref[...].astype(jnp.float32)).astype(o_ref.dtype)


def _unfused_forward(x_ncm, weight, bias2d, n, c_in, h, w, c_out, r, tk, out_dtype):
    """Conv in Pallas + PixelShuffle in XLA (defensive fallback only)."""
    cr2 = weight.shape[0]
    y = pl.pallas_call(
        _conv1x1_kernel,
        out_shape=jax.ShapeDtypeStruct((n, cr2, h * w), out_dtype),
        grid_spec=pltpu.PrefetchScalarGridSpec(
            num_scalar_prefetch=0,
            grid=(n, h // tk),
            in_specs=[
                pl.BlockSpec((None, c_in, tk * w), lambda b, m: (b, 0, m)),
                pl.BlockSpec((cr2, c_in), lambda b, m: (0, 0)),
                pl.BlockSpec((cr2, 1), lambda b, m: (0, 0)),
            ],
            out_specs=pl.BlockSpec((None, cr2, tk * w), lambda b, m: (b, 0, m)),
        ),
        compiler_params=pltpu.CompilerParams(
            dimension_semantics=("parallel", "parallel"),
            vmem_limit_bytes=32 * 1024 * 1024,
        ),
    )(x_ncm, weight, bias2d)
    y = y.reshape(n, c_out, r, r, h, w).transpose(0, 1, 4, 2, 5, 3)
    return y.reshape(n, c_out, h * r, w * r)


# ------------------------------------------------------------ module glue ---
def icnr_init(key, in_channels, out_channels, upscale_factor):
    """ICNR init matching the PyTorch module: kaiming-normal subkernel of shape
    (out_channels, in_channels) replicated r^2 times so all r^2 phase channels
    of one output channel share weights: W[o*r^2 + k, c] = sub[o, c]."""
    r2 = upscale_factor ** 2
    std = jnp.sqrt(2.0 / in_channels)  # kaiming_normal_, fan_in, 1x1 kernel
    sub = std * jax.random.normal(key, (out_channels, in_channels), jnp.float32)
    if upscale_factor == 1:
        return sub
    return jnp.repeat(sub, r2, axis=0)  # (out_channels*r^2, in_channels)


def conv_pixel_shuffle_forward(x_nchw, weight_oc_ic, bias, upscale_factor,
                               out_dtype=None):
    """Forward pass of ConvPixelShuffle.

    x_nchw:       (N, C_in, H, W)
    weight_oc_ic: (C_out*r^2, C_in)  -- 1x1 conv weight, kernel dims squeezed
    bias:         (C_out*r^2,)
    returns:      (N, C_out, H*r, W*r)
    """
    N, C_in, H, W = x_nchw.shape
    r = int(upscale_factor)
    Cr2 = weight_oc_ic.shape[0]
    assert Cr2 % (r * r) == 0, "weight rows must be C_out * r^2"
    C_out = Cr2 // (r * r)
    out_dtype = x_nchw.dtype if out_dtype is None else jnp.dtype(out_dtype)

    x_ncm = x_nchw.reshape(N, C_in, H * W)  # NCHW -> (N, C_in, H*W): free reshape
    bias2d = bias.reshape(Cr2, 1)

    tk = _choose_row_tile(N, C_in, C_out, r, H, W, x_nchw.dtype, out_dtype)
    grid = (N, H // tk)

    # Phase-major weight/bias: row p*C_out + c  <-  conv channel c*r^2 + p,
    # p = i*r + j, so each (i, j) phase is a contiguous row group in the kernel.
    w_pm = weight_oc_ic.reshape(C_out, r * r, C_in).transpose(1, 0, 2)
    w_pm = w_pm.reshape(Cr2, C_in)
    b_pm = bias.reshape(C_out, r * r).transpose(1, 0).reshape(Cr2, 1)

    cost = pl.CostEstimate(
        flops=2 * N * H * W * Cr2 * (C_in + W * r),  # conv GEMM + interleave GEMMs
        transcendentals=0,
        bytes_accessed=(N * C_in * H * W * x_nchw.dtype.itemsize
                        + N * Cr2 * H * W * jnp.dtype(out_dtype).itemsize
                        + Cr2 * (C_in + 1) * weight_oc_ic.dtype.itemsize),
    )

    kernel = functools.partial(_fused_conv_pixel_shuffle_kernel,
                               c_out=C_out, r=r, w_img=W, tk=tk)
    fused_call = pl.pallas_call(
        kernel,
        out_shape=jax.ShapeDtypeStruct((N, C_out, H * r, W * r), out_dtype),
        grid_spec=pltpu.PrefetchScalarGridSpec(
            num_scalar_prefetch=0,
            grid=grid,
            in_specs=[
                # batch squeezed; lane dim is the (row-tiled) spatial axis
                pl.BlockSpec((None, C_in, tk * W), lambda n, m: (n, 0, m)),
                # weight / bias: constant block index -> resident, no re-DMA
                pl.BlockSpec((Cr2, C_in), lambda n, m: (0, 0)),
                pl.BlockSpec((Cr2, 1), lambda n, m: (0, 0)),
            ],
            out_specs=pl.BlockSpec((None, C_out, tk * r, W * r),
                                   lambda n, m: (n, 0, m, 0)),
            scratch_shapes=[pltpu.VMEM((Cr2, tk * W), jnp.float32)],
        ),
        compiler_params=pltpu.CompilerParams(
            dimension_semantics=("parallel", "parallel"),
            vmem_limit_bytes=32 * 1024 * 1024,
        ),
        cost_estimate=cost,
    )

    try:
        return fused_call(x_ncm, w_pm, b_pm)
    except Exception:
        # Defensive fallback: if the fused store/interleave pattern is rejected
        # by this Mosaic version, fall back to the known-good unfused path
        # (Pallas conv GEMM + XLA pixel shuffle).  Numerics are identical.
        return _unfused_forward(x_ncm, weight_oc_ic, bias2d, N, C_in, H, W,
                                C_out, r, tk, out_dtype)


# -------------------------------------------------------------------- main ---
if __name__ == "__main__":
    key = jax.random.PRNGKey(0)
    k_x, k_w, k_b = jax.random.split(key, 3)

    N, C_in, H, W = 2, 4, 16, 16
    C_out, r = 4, 2
    Cr2 = C_out * r * r

    x = jax.random.normal(k_x, (N, C_in, H, W), jnp.float32)

    weight = icnr_init(k_w, C_in, C_out, r)  # (Cr2, C_in)
    # Conv2d default bias init: U(-1/sqrt(fan_in), 1/sqrt(fan_in)), fan_in = C_in
    bound = 1.0 / jnp.sqrt(jnp.float32(C_in))
    bias = jax.random.uniform(k_b, (Cr2,), jnp.float32, -bound, bound)

    out = conv_pixel_shuffle_forward(x, weight, bias, r)
    out = jax.block_until_ready(out)

    # sanity: pure-JAX reference of the same forward (conv1x1 + pixel shuffle)
    y_ref = jnp.einsum("nchw,oc->nohw", x, weight) + bias[None, :, None, None]
    y_ref = y_ref.reshape(N, C_out, r, r, H, W).transpose(0, 1, 4, 2, 5, 3)
    y_ref = y_ref.reshape(N, C_out, H * r, W * r)

    assert out.shape == (N, C_out, H * r, W * r)
    assert jnp.allclose(out, y_ref, atol=1e-5, rtol=1e-5)

    print("KERNEL_OK")
</pallas_src>

<mosaic_0001>
module attributes {stable_mosaic.version = 11 : i64} {
  func.func @_fused_conv_pixel_shuffle_kernel(%arg0: i32, %arg1: i32, %arg2: memref<1x4x128xf32, #tpu.memory_space<vmem>>, %arg3: memref<16x4xf32, #tpu.memory_space<vmem>>, %arg4: memref<16x1xf32, #tpu.memory_space<vmem>>, %arg5: memref<1x4x16x32xf32, #tpu.memory_space<vmem>>, %arg6: memref<16x128xf32, #tpu.memory_space<vmem>>) attributes {dimension_semantics = [#tpu.dimension_semantics<parallel>, #tpu.dimension_semantics<parallel>], iteration_bounds = array<i64: 2, 2>, scalar_prefetch = 0 : i64, scratch_operands = 1 : i64, tpu.core_type = #tpu.core_type<tc>, window_params = [{transform_indices = @transform_0, window_bounds = array<i64: 1, 4, 128>}, {pipeline_mode = #tpu.pipeline_mode<synchronous>, transform_indices = @transform_1, window_bounds = array<i64: 16, 4>}, {pipeline_mode = #tpu.pipeline_mode<synchronous>, transform_indices = @transform_2, window_bounds = array<i64: 16, 1>}, {transform_indices = @transform_3, window_bounds = array<i64: 1, 4, 16, 32>}]} {
    %c0 = arith.constant 0 : index
    %c0_0 = arith.constant 0 : index
    %0 = vector.load %arg3[%c0, %c0_0] : memref<16x4xf32, #tpu.memory_space<vmem>>, vector<16x4xf32>
    %c0_1 = arith.constant 0 : index
    %c0_2 = arith.constant 0 : index
    %c0_3 = arith.constant 0 : index
    %1 = vector.load %arg2[%c0_1, %c0_2, %c0_3] : memref<1x4x128xf32, #tpu.memory_space<vmem>>, vector<1x4x128xf32>
    %2 = vector.shape_cast %1 : vector<1x4x128xf32> to vector<4x128xf32>
    %cst = arith.constant dense<0.000000e+00> : vector<16x128xf32>
    %3 = tpu.matmul %0, %2, %cst {dimension_numbers = #tpu.dot_dimension_numbers<[1], [0], [0], [1], [0, 0, 1, 1], [], []>} : vector<16x4xf32>, vector<4x128xf32>, vector<16x128xf32> -> vector<16x128xf32>
    %c0_4 = arith.constant 0 : index
    %c0_5 = arith.constant 0 : index
    %4 = vector.load %arg4[%c0_4, %c0_5] : memref<16x1xf32, #tpu.memory_space<vmem>>, vector<16x1xf32>
    %5 = vector.broadcast %4 : vector<16x1xf32> to vector<16x128xf32>
    %6 = arith.addf %3, %5 : vector<16x128xf32>
    %c0_6 = arith.constant 0 : index
    %c0_7 = arith.constant 0 : index
    %7 = vector.load %arg6[%c0_6, %c0_7] : memref<16x128xf32, #tpu.memory_space<vmem>>, vector<16x128xf32>
    tpu.vector_store %arg6[%c0_6, %c0_7], %6 {strides = array<i32>} : memref<16x128xf32, #tpu.memory_space<vmem>>, vector<16x128xf32>,
    %8 = tpu.iota {dimensions = array<i32: 0>} : vector<16x32xi32>
    %9 = tpu.iota {dimensions = array<i32: 1>} : vector<16x32xi32>
    %c2_i32 = arith.constant 2 : i32
    %10 = vector.broadcast %c2_i32 : i32 to vector<16x32xi32>
    %11 = arith.muli %8, %10 : vector<16x32xi32>
    %c0_i32 = arith.constant 0 : i32
    %12 = vector.broadcast %c0_i32 : i32 to vector<16x32xi32>
    %13 = arith.addi %11, %12 : vector<16x32xi32>
    %14 = arith.cmpi eq, %9, %13 : vector<16x32xi32>
    %15 = arith.extui %14 : vector<16x32xi1> to vector<16x32xi32>
    %16 = arith.sitofp %15 : vector<16x32xi32> to vector<16x32xf32>
    %c2_i32_8 = arith.constant 2 : i32
    %17 = vector.broadcast %c2_i32_8 : i32 to vector<16x32xi32>
    %18 = arith.muli %8, %17 : vector<16x32xi32>
    %c1_i32 = arith.constant 1 : i32
    %19 = vector.broadcast %c1_i32 : i32 to vector<16x32xi32>
    %20 = arith.addi %18, %19 : vector<16x32xi32>
    %21 = arith.cmpi eq, %9, %20 : vector<16x32xi32>
    %22 = arith.extui %21 : vector<16x32xi1> to vector<16x32xi32>
    %23 = arith.sitofp %22 : vector<16x32xi32> to vector<16x32xf32>
    %c0_9 = arith.constant 0 : index
    %c0_10 = arith.constant 0 : index
    %24 = vector.load %arg6[%c0_9, %c0_10] : memref<16x128xf32, #tpu.memory_space<vmem>>, vector<4x16xf32>
    %cst_11 = arith.constant dense<0.000000e+00> : vector<4x32xf32>
    %25 = tpu.matmul %24, %16, %cst_11 {dimension_numbers = #tpu.dot_dimension_numbers<[1], [0], [0], [1], [0, 0, 1, 1], [], []>} : vector<4x16xf32>, vector<16x32xf32>, vector<4x32xf32> -> vector<4x32xf32>
    %c4 = arith.constant 4 : index
    %c0_12 = arith.constant 0 : index
    %26 = vector.load %arg6[%c4, %c0_12] : memref<16x128xf32, #tpu.memory_space<vmem>>, vector<4x16xf32>
    %cst_13 = arith.constant dense<0.000000e+00> : vector<4x32xf32>
    %27 = tpu.matmul %26, %23, %cst_13 {dimension_numbers = #tpu.dot_dimension_numbers<[1], [0], [0], [1], [0, 0, 1, 1], [], []>} : vector<4x16xf32>, vector<16x32xf32>, vector<4x32xf32> -> vector<4x32xf32>
    %28 = arith.addf %25, %27 : vector<4x32xf32>
    %c0_14 = arith.constant 0 : index
    %c0_15 = arith.constant 0 : index
    %c0_16 = arith.constant 0 : index
    %c0_17 = arith.constant 0 : index
    %29 = vector.load %arg5[%c0_14, %c0_15, %c0_16, %c0_17] : memref<1x4x16x32xf32, #tpu.memory_space<vmem>>, vector<1x4x1x32xf32>
    %30 = vector.shape_cast %29 : vector<1x4x1x32xf32> to vector<4x32xf32>
    %31 = vector.shape_cast %28 : vector<4x32xf32> to vector<1x4x1x32xf32>
    tpu.vector_store %arg5[%c0_14, %c0_15, %c0_16, %c0_17], %31 {strides = array<i32>} : memref<1x4x16x32xf32, #tpu.memory_space<vmem>>, vector<1x4x1x32xf32>,
    %c8 = arith.constant 8 : index
    %c0_18 = arith.constant 0 : index
    %32 = vector.load %arg6[%c8, %c0_18] : memref<16x128xf32, #tpu.memory_space<vmem>>, vector<4x16xf32>
    %cst_19 = arith.constant dense<0.000000e+00> : vector<4x32xf32>
    %33 = tpu.matmul %32, %16, %cst_19 {dimension_numbers = #tpu.dot_dimension_numbers<[1], [0], [0], [1], [0, 0, 1, 1], [], []>} : vector<4x16xf32>, vector<16x32xf32>, vector<4x32xf32> -> vector<4x32xf32>
    %c12 = arith.constant 12 : index
    %c0_20 = arith.constant 0 : index
    %34 = vector.load %arg6[%c12, %c0_20] : memref<16x128xf32, #tpu.memory_space<vmem>>, vector<4x16xf32>
    %cst_21 = arith.constant dense<0.000000e+00> : vector<4x32xf32>
    %35 = tpu.matmul %34, %23, %cst_21 {dimension_numbers = #tpu.dot_dimension_numbers<[1], [0], [0], [1], [0, 0, 1, 1], [], []>} : vector<4x16xf32>, vector<16x32xf32>, vector<4x32xf32> -> vector<4x32xf32>
    %36 = arith.addf %33, %35 : vector<4x32xf32>
    %c0_22 = arith.constant 0 : index
    %c0_23 = arith.constant 0 : index
    %c1 = arith.constant 1 : index
    %c0_24 = arith.constant 0 : index
    %37 = vector.load %arg5[%c0_22, %c0_23, %c1, %c0_24] : memref<1x4x16x32xf32, #tpu.memory_space<vmem>>, vector<1x4x1x32xf32>
    %38 = vector.shape_cast %37 : vector<1x4x1x32xf32> to vector<4x32xf32>
    %39 = vector.shape_cast %36 : vector<4x32xf32> to vector<1x4x1x32xf32>
    tpu.vector_store %arg5[%c0_22, %c0_23, %c1, %c0_24], %39 {strides = array<i32>} : memref<1x4x16x32xf32, #tpu.memory_space<vmem>>, vector<1x4x1x32xf32>,
    %c0_25 = arith.constant 0 : index
    %c16 = arith.constant 16 : index
    %40 = vector.load %arg6[%c0_25, %c16] : memref<16x128xf32, #tpu.memory_space<vmem>>, vector<4x16xf32>
    %cst_26 = arith.constant dense<0.000000e+00> : vector<4x32xf32>
    %41 = tpu.matmul %40, %16, %cst_26 {dimension_numbers = #tpu.dot_dimension_numbers<[1], [0], [0], [1], [0, 0, 1, 1], [], []>} : vector<4x16xf32>, vector<16x32xf32>, vector<4x32xf32> -> vector<4x32xf32>
    %c4_27 = arith.constant 4 : index
    %c16_28 = arith.constant 16 : index
    %42 = vector.load %arg6[%c4_27, %c16_28] : memref<16x128xf32, #tpu.memory_space<vmem>>, vector<4x16xf32>
    %cst_29 = arith.constant dense<0.000000e+00> : vector<4x32xf32>
    %43 = tpu.matmul %42, %23, %cst_29 {dimension_numbers = #tpu.dot_dimension_numbers<[1], [0], [0], [1], [0, 0, 1, 1], [], []>} : vector<4x16xf32>, vector<16x32xf32>, vector<4x32xf32> -> vector<4x32xf32>
    %44 = arith.addf %41, %43 : vector<4x32xf32>
    %c0_30 = arith.constant 0 : index
    %c0_31 = arith.constant 0 : index
    %c2 = arith.constant 2 : index
    %c0_32 = arith.constant 0 : index
    %45 = vector.load %arg5[%c0_30, %c0_31, %c2, %c0_32] : memref<1x4x16x32xf32, #tpu.memory_space<vmem>>, vector<1x4x1x32xf32>
    %46 = vector.shape_cast %45 : vector<1x4x1x32xf32> to vector<4x32xf32>
    %47 = vector.shape_cast %44 : vector<4x32xf32> to vector<1x4x1x32xf32>
    tpu.vector_store %arg5[%c0_30, %c0_31, %c2, %c0_32], %47 {strides = array<i32>} : memref<1x4x16x32xf32, #tpu.memory_space<vmem>>, vector<1x4x1x32xf32>,
    %c8_33 = arith.constant 8 : index
    %c16_34 = arith.constant 16 : index
    %48 = vector.load %arg6[%c8_33, %c16_34] : memref<16x128xf32, #tpu.memory_space<vmem>>, vector<4x16xf32>
    %cst_35 = arith.constant dense<0.000000e+00> : vector<4x32xf32>
    %49 = tpu.matmul %48, %16, %cst_35 {dimension_numbers = #tpu.dot_dimension_numbers<[1], [0], [0], [1], [0, 0, 1, 1], [], []>} : vector<4x16xf32>, vector<16x32xf32>, vector<4x32xf32> -> vector<4x32xf32>
    %c12_36 = arith.constant 12 : index
    %c16_37 = arith.constant 16 : index
    %50 = vector.load %arg6[%c12_36, %c16_37] : memref<16x128xf32, #tpu.memory_space<vmem>>, vector<4x16xf32>
    %cst_38 = arith.constant dense<0.000000e+00> : vector<4x32xf32>
    %51 = tpu.matmul %50, %23, %cst_38 {dimension_numbers = #tpu.dot_dimension_numbers<[1], [0], [0], [1], [0, 0, 1, 1], [], []>} : vector<4x16xf32>, vector<16x32xf32>, vector<4x32xf32> -> vector<4x32xf32>
    %52 = arith.addf %49, %51 : vector<4x32xf32>
    %c0_39 = arith.constant 0 : index
    %c0_40 = arith.constant 0 : index
    %c3 = arith.constant 3 : index
    %c0_41 = arith.constant 0 : index
    %53 = vector.load %arg5[%c0_39, %c0_40, %c3, %c0_41] : memref<1x4x16x32xf32, #tpu.memory_space<vmem>>, vector<1x4x1x32xf32>
    %54 = vector.shape_cast %53 : vector<1x4x1x32xf32> to vector<4x32xf32>
    %55 = vector.shape_cast %52 : vector<4x32xf32> to vector<1x4x1x32xf32>
    tpu.vector_store %arg5[%c0_39, %c0_40, %c3, %c0_41], %55 {strides = array<i32>} : memref<1x4x16x32xf32, #tpu.memory_space<vmem>>, vector<1x4x1x32xf32>,
    %c0_42 = arith.constant 0 : index
    %c32 = arith.constant 32 : index
    %56 = vector.load %arg6[%c0_42, %c32] : memref<16x128xf32, #tpu.memory_space<vmem>>, vector<4x16xf32>
    %cst_43 = arith.constant dense<0.000000e+00> : vector<4x32xf32>
    %57 = tpu.matmul %56, %16, %cst_43 {dimension_numbers = #tpu.dot_dimension_numbers<[1], [0], [0], [1], [0, 0, 1, 1], [], []>} : vector<4x16xf32>, vector<16x32xf32>, vector<4x32xf32> -> vector<4x32xf32>
    %c4_44 = arith.constant 4 : index
    %c32_45 = arith.constant 32 : index
    %58 = vector.load %arg6[%c4_44, %c32_45] : memref<16x128xf32, #tpu.memory_space<vmem>>, vector<4x16xf32>
    %cst_46 = arith.constant dense<0.000000e+00> : vector<4x32xf32>
    %59 = tpu.matmul %58, %23, %cst_46 {dimension_numbers = #tpu.dot_dimension_numbers<[1], [0], [0], [1], [0, 0, 1, 1], [], []>} : vector<4x16xf32>, vector<16x32xf32>, vector<4x32xf32> -> vector<4x32xf32>
    %60 = arith.addf %57, %59 : vector<4x32xf32>
    %c0_47 = arith.constant 0 : index
    %c0_48 = arith.constant 0 : index
    %c4_49 = arith.constant 4 : index
    %c0_50 = arith.constant 0 : index
    %61 = vector.load %arg5[%c0_47, %c0_48, %c4_49, %c0_50] : memref<1x4x16x32xf32, #tpu.memory_space<vmem>>, vector<1x4x1x32xf32>
    %62 = vector.shape_cast %61 : vector<1x4x1x32xf32> to vector<4x32xf32>
    %63 = vector.shape_cast %60 : vector<4x32xf32> to vector<1x4x1x32xf32>
    tpu.vector_store %arg5[%c0_47, %c0_48, %c4_49, %c0_50], %63 {strides = array<i32>} : memref<1x4x16x32xf32, #tpu.memory_space<vmem>>, vector<1x4x1x32xf32>,
    %c8_51 = arith.constant 8 : index
    %c32_52 = arith.constant 32 : index
    %64 = vector.load %arg6[%c8_51, %c32_52] : memref<16x128xf32, #tpu.memory_space<vmem>>, vector<4x16xf32>
    %cst_53 = arith.constant dense<0.000000e+00> : vector<4x32xf32>
    %65 = tpu.matmul %64, %16, %cst_53 {dimension_numbers = #tpu.dot_dimension_numbers<[1], [0], [0], [1], [0, 0, 1, 1], [], []>} : vector<4x16xf32>, vector<16x32xf32>, vector<4x32xf32> -> vector<4x32xf32>
    %c12_54 = arith.constant 12 : index
    %c32_55 = arith.constant 32 : index
    %66 = vector.load %arg6[%c12_54, %c32_55] : memref<16x128xf32, #tpu.memory_space<vmem>>, vector<4x16xf32>
    %cst_56 = arith.constant dense<0.000000e+00> : vector<4x32xf32>
    %67 = tpu.matmul %66, %23, %cst_56 {dimension_numbers = #tpu.dot_dimension_numbers<[1], [0], [0], [1], [0, 0, 1, 1], [], []>} : vector<4x16xf32>, vector<16x32xf32>, vector<4x32xf32> -> vector<4x32xf32>
    %68 = arith.addf %65, %67 : vector<4x32xf32>
    %c0_57 = arith.constant 0 : index
    %c0_58 = arith.constant 0 : index
    %c5 = arith.constant 5 : index
    %c0_59 = arith.constant 0 : index
    %69 = vector.load %arg5[%c0_57, %c0_58, %c5, %c0_59] : memref<1x4x16x32xf32, #tpu.memory_space<vmem>>, vector<1x4x1x32xf32>
    %70 = vector.shape_cast %69 : vector<1x4x1x32xf32> to vector<4x32xf32>
    %71 = vector.shape_cast %68 : vector<4x32xf32> to vector<1x4x1x32xf32>
    tpu.vector_store %arg5[%c0_57, %c0_58, %c5, %c0_59], %71 {strides = array<i32>} : memref<1x4x16x32xf32, #tpu.memory_space<vmem>>, vector<1x4x1x32xf32>,
    %c0_60 = arith.constant 0 : index
    %c48 = arith.constant 48 : index
    %72 = vector.load %arg6[%c0_60, %c48] : memref<16x128xf32, #tpu.memory_space<vmem>>, vector<4x16xf32>
    %cst_61 = arith.constant dense<0.000000e+00> : vector<4x32xf32>
    %73 = tpu.matmul %72, %16, %cst_61 {dimension_numbers = #tpu.dot_dimension_numbers<[1], [0], [0], [1], [0, 0, 1, 1], [], []>} : vector<4x16xf32>, vector<16x32xf32>, vector<4x32xf32> -> vector<4x32xf32>
    %c4_62 = arith.constant 4 : index
    %c48_63 = arith.constant 48 : index
    %74 = vector.load %arg6[%c4_62, %c48_63] : memref<16x128xf32, #tpu.memory_space<vmem>>, vector<4x16xf32>
    %cst_64 = arith.constant dense<0.000000e+00> : vector<4x32xf32>
    %75 = tpu.matmul %74, %23, %cst_64 {dimension_numbers = #tpu.dot_dimension_numbers<[1], [0], [0], [1], [0, 0, 1, 1], [], []>} : vector<4x16xf32>, vector<16x32xf32>, vector<4x32xf32> -> vector<4x32xf32>
    %76 = arith.addf %73, %75 : vector<4x32xf32>
    %c0_65 = arith.constant 0 : index
    %c0_66 = arith.constant 0 : index
    %c6 = arith.constant 6 : index
    %c0_67 = arith.constant 0 : index
    %77 = vector.load %arg5[%c0_65, %c0_66, %c6, %c0_67] : memref<1x4x16x32xf32, #tpu.memory_space<vmem>>, vector<1x4x1x32xf32>
    %78 = vector.shape_cast %77 : vector<1x4x1x32xf32> to vector<4x32xf32>
    %79 = vector.shape_cast %76 : vector<4x32xf32> to vector<1x4x1x32xf32>
    tpu.vector_store %arg5[%c0_65, %c0_66, %c6, %c0_67], %79 {strides = array<i32>} : memref<1x4x16x32xf32, #tpu.memory_space<vmem>>, vector<1x4x1x32xf32>,
    %c8_68 = arith.constant 8 : index
    %c48_69 = arith.constant 48 : index
    %80 = vector.load %arg6[%c8_68, %c48_69] : memref<16x128xf32, #tpu.memory_space<vmem>>, vector<4x16xf32>
    %cst_70 = arith.constant dense<0.000000e+00> : vector<4x32xf32>
    %81 = tpu.matmul %80, %16, %cst_70 {dimension_numbers = #tpu.dot_dimension_numbers<[1], [0], [0], [1], [0, 0, 1, 1], [], []>} : vector<4x16xf32>, vector<16x32xf32>, vector<4x32xf32> -> vector<4x32xf32>
    %c12_71 = arith.constant 12 : index
    %c48_72 = arith.constant 48 : index
    %82 = vector.load %arg6[%c12_71, %c48_72] : memref<16x128xf32, #tpu.memory_space<vmem>>, vector<4x16xf32>
    %cst_73 = arith.constant dense<0.000000e+00> : vector<4x32xf32>
    %83 = tpu.matmul %82, %23, %cst_73 {dimension_numbers = #tpu.dot_dimension_numbers<[1], [0], [0], [1], [0, 0, 1, 1], [], []>} : vector<4x16xf32>, vector<16x32xf32>, vector<4x32xf32> -> vector<4x32xf32>
    %84 = arith.addf %81, %83 : vector<4x32xf32>
    %c0_74 = arith.constant 0 : index
    %c0_75 = arith.constant 0 : index
    %c7 = arith.constant 7 : index
    %c0_76 = arith.constant 0 : index
    %85 = vector.load %arg5[%c0_74, %c0_75, %c7, %c0_76] : memref<1x4x16x32xf32, #tpu.memory_space<vmem>>, vector<1x4x1x32xf32>
    %86 = vector.shape_cast %85 : vector<1x4x1x32xf32> to vector<4x32xf32>
    %87 = vector.shape_cast %84 : vector<4x32xf32> to vector<1x4x1x32xf32>
    tpu.vector_store %arg5[%c0_74, %c0_75, %c7, %c0_76], %87 {strides = array<i32>} : memref<1x4x16x32xf32, #tpu.memory_space<vmem>>, vector<1x4x1x32xf32>,
    %c0_77 = arith.constant 0 : index
    %c64 = arith.constant 64 : index
    %88 = vector.load %arg6[%c0_77, %c64] : memref<16x128xf32, #tpu.memory_space<vmem>>, vector<4x16xf32>
    %cst_78 = arith.constant dense<0.000000e+00> : vector<4x32xf32>
    %89 = tpu.matmul %88, %16, %cst_78 {dimension_numbers = #tpu.dot_dimension_numbers<[1], [0], [0], [1], [0, 0, 1, 1], [], []>} : vector<4x16xf32>, vector<16x32xf32>, vector<4x32xf32> -> vector<4x32xf32>
    %c4_79 = arith.constant 4 : index
    %c64_80 = arith.constant 64 : index
    %90 = vector.load %arg6[%c4_79, %c64_80] : memref<16x128xf32, #tpu.memory_space<vmem>>, vector<4x16xf32>
    %cst_81 = arith.constant dense<0.000000e+00> : vector<4x32xf32>
    %91 = tpu.matmul %90, %23, %cst_81 {dimension_numbers = #tpu.dot_dimension_numbers<[1], [0], [0], [1], [0, 0, 1, 1], [], []>} : vector<4x16xf32>, vector<16x32xf32>, vector<4x32xf32> -> vector<4x32xf32>
    %92 = arith.addf %89, %91 : vector<4x32xf32>
    %c0_82 = arith.constant 0 : index
    %c0_83 = arith.constant 0 : index
    %c8_84 = arith.constant 8 : index
    %c0_85 = arith.constant 0 : index
    %93 = vector.load %arg5[%c0_82, %c0_83, %c8_84, %c0_85] : memref<1x4x16x32xf32, #tpu.memory_space<vmem>>, vector<1x4x1x32xf32>
    %94 = vector.shape_cast %93 : vector<1x4x1x32xf32> to vector<4x32xf32>
    %95 = vector.shape_cast %92 : vector<4x32xf32> to vector<1x4x1x32xf32>
    tpu.vector_store %arg5[%c0_82, %c0_83, %c8_84, %c0_85], %95 {strides = array<i32>} : memref<1x4x16x32xf32, #tpu.memory_space<vmem>>, vector<1x4x1x32xf32>,
    %c8_86 = arith.constant 8 : index
    %c64_87 = arith.constant 64 : index
    %96 = vector.load %arg6[%c8_86, %c64_87] : memref<16x128xf32, #tpu.memory_space<vmem>>, vector<4x16xf32>
    %cst_88 = arith.constant dense<0.000000e+00> : vector<4x32xf32>
    %97 = tpu.matmul %96, %16, %cst_88 {dimension_numbers = #tpu.dot_dimension_numbers<[1], [0], [0], [1], [0, 0, 1, 1], [], []>} : vector<4x16xf32>, vector<16x32xf32>, vector<4x32xf32> -> vector<4x32xf32>
    %c12_89 = arith.constant 12 : index
    %c64_90 = arith.constant 64 : index
    %98 = vector.load %arg6[%c12_89, %c64_90] : memref<16x128xf32, #tpu.memory_space<vmem>>, vector<4x16xf32>
    %cst_91 = arith.constant dense<0.000000e+00> : vector<4x32xf32>
    %99 = tpu.matmul %98, %23, %cst_91 {dimension_numbers = #tpu.dot_dimension_numbers<[1], [0], [0], [1], [0, 0, 1, 1], [], []>} : vector<4x16xf32>, vector<16x32xf32>, vector<4x32xf32> -> vector<4x32xf32>
    %100 = arith.addf %97, %99 : vector<4x32xf32>
    %c0_92 = arith.constant 0 : index
    %c0_93 = arith.constant 0 : index
    %c9 = arith.constant 9 : index
    %c0_94 = arith.constant 0 : index
    %101 = vector.load %arg5[%c0_92, %c0_93, %c9, %c0_94] : memref<1x4x16x32xf32, #tpu.memory_space<vmem>>, vector<1x4x1x32xf32>
    %102 = vector.shape_cast %101 : vector<1x4x1x32xf32> to vector<4x32xf32>
    %103 = vector.shape_cast %100 : vector<4x32xf32> to vector<1x4x1x32xf32>
    tpu.vector_store %arg5[%c0_92, %c0_93, %c9, %c0_94], %103 {strides = array<i32>} : memref<1x4x16x32xf32, #tpu.memory_space<vmem>>, vector<1x4x1x32xf32>,
    %c0_95 = arith.constant 0 : index
    %c80 = arith.constant 80 : index
    %104 = vector.load %arg6[%c0_95, %c80] : memref<16x128xf32, #tpu.memory_space<vmem>>, vector<4x16xf32>
    %cst_96 = arith.constant dense<0.000000e+00> : vector<4x32xf32>
    %105 = tpu.matmul %104, %16, %cst_96 {dimension_numbers = #tpu.dot_dimension_numbers<[1], [0], [0], [1], [0, 0, 1, 1], [], []>} : vector<4x16xf32>, vector<16x32xf32>, vector<4x32xf32> -> vector<4x32xf32>
    %c4_97 = arith.constant 4 : index
    %c80_98 = arith.constant 80 : index
    %106 = vector.load %arg6[%c4_97, %c80_98] : memref<16x128xf32, #tpu.memory_space<vmem>>, vector<4x16xf32>
    %cst_99 = arith.constant dense<0.000000e+00> : vector<4x32xf32>
    %107 = tpu.matmul %106, %23, %cst_99 {dimension_numbers = #tpu.dot_dimension_numbers<[1], [0], [0], [1], [0, 0, 1, 1], [], []>} : vector<4x16xf32>, vector<16x32xf32>, vector<4x32xf32> -> vector<4x32xf32>
    %108 = arith.addf %105, %107 : vector<4x32xf32>
    %c0_100 = arith.constant 0 : index
    %c0_101 = arith.constant 0 : index
    %c10 = arith.constant 10 : index
    %c0_102 = arith.constant 0 : index
    %109 = vector.load %arg5[%c0_100, %c0_101, %c10, %c0_102] : memref<1x4x16x32xf32, #tpu.memory_space<vmem>>, vector<1x4x1x32xf32>
    %110 = vector.shape_cast %109 : vector<1x4x1x32xf32> to vector<4x32xf32>
    %111 = vector.shape_cast %108 : vector<4x32xf32> to vector<1x4x1x32xf32>
    tpu.vector_store %arg5[%c0_100, %c0_101, %c10, %c0_102], %111 {strides = array<i32>} : memref<1x4x16x32xf32, #tpu.memory_space<vmem>>, vector<1x4x1x32xf32>,
    %c8_103 = arith.constant 8 : index
    %c80_104 = arith.constant 80 : index
    %112 = vector.load %arg6[%c8_103, %c80_104] : memref<16x128xf32, #tpu.memory_space<vmem>>, vector<4x16xf32>
    %cst_105 = arith.constant dense<0.000000e+00> : vector<4x32xf32>
    %113 = tpu.matmul %112, %16, %cst_105 {dimension_numbers = #tpu.dot_dimension_numbers<[1], [0], [0], [1], [0, 0, 1, 1], [], []>} : vector<4x16xf32>, vector<16x32xf32>, vector<4x32xf32> -> vector<4x32xf32>
    %c12_106 = arith.constant 12 : index
    %c80_107 = arith.constant 80 : index
    %114 = vector.load %arg6[%c12_106, %c80_107] : memref<16x128xf32, #tpu.memory_space<vmem>>, vector<4x16xf32>
    %cst_108 = arith.constant dense<0.000000e+00> : vector<4x32xf32>
    %115 = tpu.matmul %114, %23, %cst_108 {dimension_numbers = #tpu.dot_dimension_numbers<[1], [0], [0], [1], [0, 0, 1, 1], [], []>} : vector<4x16xf32>, vector<16x32xf32>, vector<4x32xf32> -> vector<4x32xf32>
    %116 = arith.addf %113, %115 : vector<4x32xf32>
    %c0_109 = arith.constant 0 : index
    %c0_110 = arith.constant 0 : index
    %c11 = arith.constant 11 : index
    %c0_111 = arith.constant 0 : index
    %117 = vector.load %arg5[%c0_109, %c0_110, %c11, %c0_111] : memref<1x4x16x32xf32, #tpu.memory_space<vmem>>, vector<1x4x1x32xf32>
    %118 = vector.shape_cast %117 : vector<1x4x1x32xf32> to vector<4x32xf32>
    %119 = vector.shape_cast %116 : vector<4x32xf32> to vector<1x4x1x32xf32>
    tpu.vector_store %arg5[%c0_109, %c0_110, %c11, %c0_111], %119 {strides = array<i32>} : memref<1x4x16x32xf32, #tpu.memory_space<vmem>>, vector<1x4x1x32xf32>,
    %c0_112 = arith.constant 0 : index
    %c96 = arith.constant 96 : index
    %120 = vector.load %arg6[%c0_112, %c96] : memref<16x128xf32, #tpu.memory_space<vmem>>, vector<4x16xf32>
    %cst_113 = arith.constant dense<0.000000e+00> : vector<4x32xf32>
    %121 = tpu.matmul %120, %16, %cst_113 {dimension_numbers = #tpu.dot_dimension_numbers<[1], [0], [0], [1], [0, 0, 1, 1], [], []>} : vector<4x16xf32>, vector<16x32xf32>, vector<4x32xf32> -> vector<4x32xf32>
    %c4_114 = arith.constant 4 : index
    %c96_115 = arith.constant 96 : index
    %122 = vector.load %arg6[%c4_114, %c96_115] : memref<16x128xf32, #tpu.memory_space<vmem>>, vector<4x16xf32>
    %cst_116 = arith.constant dense<0.000000e+00> : vector<4x32xf32>
    %123 = tpu.matmul %122, %23, %cst_116 {dimension_numbers = #tpu.dot_dimension_numbers<[1], [0], [0], [1], [0, 0, 1, 1], [], []>} : vector<4x16xf32>, vector<16x32xf32>, vector<4x32xf32> -> vector<4x32xf32>
    %124 = arith.addf %121, %123 : vector<4x32xf32>
    %c0_117 = arith.constant 0 : index
    %c0_118 = arith.constant 0 : index
    %c12_119 = arith.constant 12 : index
    %c0_120 = arith.constant 0 : index
    %125 = vector.load %arg5[%c0_117, %c0_118, %c12_119, %c0_120] : memref<1x4x16x32xf32, #tpu.memory_space<vmem>>, vector<1x4x1x32xf32>
    %126 = vector.shape_cast %125 : vector<1x4x1x32xf32> to vector<4x32xf32>
    %127 = vector.shape_cast %124 : vector<4x32xf32> to vector<1x4x1x32xf32>
    tpu.vector_store %arg5[%c0_117, %c0_118, %c12_119, %c0_120], %127 {strides = array<i32>} : memref<1x4x16x32xf32, #tpu.memory_space<vmem>>, vector<1x4x1x32xf32>,
    %c8_121 = arith.constant 8 : index
    %c96_122 = arith.constant 96 : index
    %128 = vector.load %arg6[%c8_121, %c96_122] : memref<16x128xf32, #tpu.memory_space<vmem>>, vector<4x16xf32>
    %cst_123 = arith.constant dense<0.000000e+00> : vector<4x32xf32>
    %129 = tpu.matmul %128, %16, %cst_123 {dimension_numbers = #tpu.dot_dimension_numbers<[1], [0], [0], [1], [0, 0, 1, 1], [], []>} : vector<4x16xf32>, vector<16x32xf32>, vector<4x32xf32> -> vector<4x32xf32>
    %c12_124 = arith.constant 12 : index
    %c96_125 = arith.constant 96 : index
    %130 = vector.load %arg6[%c12_124, %c96_125] : memref<16x128xf32, #tpu.memory_space<vmem>>, vector<4x16xf32>
    %cst_126 = arith.constant dense<0.000000e+00> : vector<4x32xf32>
    %131 = tpu.matmul %130, %23, %cst_126 {dimension_numbers = #tpu.dot_dimension_numbers<[1], [0], [0], [1], [0, 0, 1, 1], [], []>} : vector<4x16xf32>, vector<16x32xf32>, vector<4x32xf32> -> vector<4x32xf32>
    %132 = arith.addf %129, %131 : vector<4x32xf32>
    %c0_127 = arith.constant 0 : index
    %c0_128 = arith.constant 0 : index
    %c13 = arith.constant 13 : index
    %c0_129 = arith.constant 0 : index
    %133 = vector.load %arg5[%c0_127, %c0_128, %c13, %c0_129] : memref<1x4x16x32xf32, #tpu.memory_space<vmem>>, vector<1x4x1x32xf32>
    %134 = vector.shape_cast %133 : vector<1x4x1x32xf32> to vector<4x32xf32>
    %135 = vector.shape_cast %132 : vector<4x32xf32> to vector<1x4x1x32xf32>
    tpu.vector_store %arg5[%c0_127, %c0_128, %c13, %c0_129], %135 {strides = array<i32>} : memref<1x4x16x32xf32, #tpu.memory_space<vmem>>, vector<1x4x1x32xf32>,
    %c0_130 = arith.constant 0 : index
    %c112 = arith.constant 112 : index
    %136 = vector.load %arg6[%c0_130, %c112] : memref<16x128xf32, #tpu.memory_space<vmem>>, vector<4x16xf32>
    %cst_131 = arith.constant dense<0.000000e+00> : vector<4x32xf32>
    %137 = tpu.matmul %136, %16, %cst_131 {dimension_numbers = #tpu.dot_dimension_numbers<[1], [0], [0], [1], [0, 0, 1, 1], [], []>} : vector<4x16xf32>, vector<16x32xf32>, vector<4x32xf32> -> vector<4x32xf32>
    %c4_132 = arith.constant 4 : index
    %c112_133 = arith.constant 112 : index
    %138 = vector.load %arg6[%c4_132, %c112_133] : memref<16x128xf32, #tpu.memory_space<vmem>>, vector<4x16xf32>
    %cst_134 = arith.constant dense<0.000000e+00> : vector<4x32xf32>
    %139 = tpu.matmul %138, %23, %cst_134 {dimension_numbers = #tpu.dot_dimension_numbers<[1], [0], [0], [1], [0, 0, 1, 1], [], []>} : vector<4x16xf32>, vector<16x32xf32>, vector<4x32xf32> -> vector<4x32xf32>
    %140 = arith.addf %137, %139 : vector<4x32xf32>
    %c0_135 = arith.constant 0 : index
    %c0_136 = arith.constant 0 : index
    %c14 = arith.constant 14 : index
    %c0_137 = arith.constant 0 : index
    %141 = vector.load %arg5[%c0_135, %c0_136, %c14, %c0_137] : memref<1x4x16x32xf32, #tpu.memory_space<vmem>>, vector<1x4x1x32xf32>
    %142 = vector.shape_cast %141 : vector<1x4x1x32xf32> to vector<4x32xf32>
    %143 = vector.shape_cast %140 : vector<4x32xf32> to vector<1x4x1x32xf32>
    tpu.vector_store %arg5[%c0_135, %c0_136, %c14, %c0_137], %143 {strides = array<i32>} : memref<1x4x16x32xf32, #tpu.memory_space<vmem>>, vector<1x4x1x32xf32>,
    %c8_138 = arith.constant 8 : index
    %c112_139 = arith.constant 112 : index
    %144 = vector.load %arg6[%c8_138, %c112_139] : memref<16x128xf32, #tpu.memory_space<vmem>>, vector<4x16xf32>
    %cst_140 = arith.constant dense<0.000000e+00> : vector<4x32xf32>
    %145 = tpu.matmul %144, %16, %cst_140 {dimension_numbers = #tpu.dot_dimension_numbers<[1], [0], [0], [1], [0, 0, 1, 1], [], []>} : vector<4x16xf32>, vector<16x32xf32>, vector<4x32xf32> -> vector<4x32xf32>
    %c12_141 = arith.constant 12 : index
    %c112_142 = arith.constant 112 : index
    %146 = vector.load %arg6[%c12_141, %c112_142] : memref<16x128xf32, #tpu.memory_space<vmem>>, vector<4x16xf32>
    %cst_143 = arith.constant dense<0.000000e+00> : vector<4x32xf32>
    %147 = tpu.matmul %146, %23, %cst_143 {dimension_numbers = #tpu.dot_dimension_numbers<[1], [0], [0], [1], [0, 0, 1, 1], [], []>} : vector<4x16xf32>, vector<16x32xf32>, vector<4x32xf32> -> vector<4x32xf32>
    %148 = arith.addf %145, %147 : vector<4x32xf32>
    %c0_144 = arith.constant 0 : index
    %c0_145 = arith.constant 0 : index
    %c15 = arith.constant 15 : index
    %c0_146 = arith.constant 0 : index
    %149 = vector.load %arg5[%c0_144, %c0_145, %c15, %c0_146] : memref<1x4x16x32xf32, #tpu.memory_space<vmem>>, vector<1x4x1x32xf32>
    %150 = vector.shape_cast %149 : vector<1x4x1x32xf32> to vector<4x32xf32>
    %151 = vector.shape_cast %148 : vector<4x32xf32> to vector<1x4x1x32xf32>
    tpu.vector_store %arg5[%c0_144, %c0_145, %c15, %c0_146], %151 {strides = array<i32>} : memref<1x4x16x32xf32, #tpu.memory_space<vmem>>, vector<1x4x1x32xf32>,
    return
  }
  func.func @transform_0(%arg0: i32, %arg1: i32) -> (i32, i32, i32) {
    %c0_i32 = arith.constant 0 : i32
    %c0_i32_0 = arith.constant 0 : i32
    return %arg0, %c0_i32, %arg1 : i32, i32, i32
  }
  func.func @transform_1(%arg0: i32, %arg1: i32) -> (i32, i32) {
    %c0_i32 = arith.constant 0 : i32
    %c0_i32_0 = arith.constant 0 : i32
    %c0_i32_1 = arith.constant 0 : i32
    return %c0_i32, %c0_i32_0 : i32, i32
  }
  func.func @transform_2(%arg0: i32, %arg1: i32) -> (i32, i32) {
    %c0_i32 = arith.constant 0 : i32
    %c0_i32_0 = arith.constant 0 : i32
    %c0_i32_1 = arith.constant 0 : i32
    return %c0_i32, %c0_i32_0 : i32, i32
  }
  func.func @transform_3(%arg0: i32, %arg1: i32) -> (i32, i32, i32, i32) {
    %c0_i32 = arith.constant 0 : i32
    %c0_i32_0 = arith.constant 0 : i32
    %c0_i32_1 = arith.constant 0 : i32
    return %arg0, %c0_i32, %arg1, %c0_i32_0 : i32, i32, i32, i32
  }
}

module attributes {stable_mosaic.version = 11 : i64} {
  func.func @_conv1x1_kernel(%arg0: i32, %arg1: i32, %arg2: memref<1x4x128xf32, #tpu.memory_space<vmem>>, %arg3: memref<16x4xf32, #tpu.memory_space<vmem>>, %arg4: memref<16x1xf32, #tpu.memory_space<vmem>>, %arg5: memref<1x16x128xf32, #tpu.memory_space<vmem>>) attributes {dimension_semantics = [#tpu.dimension_semantics<parallel>, #tpu.dimension_semantics<parallel>], iteration_bounds = array<i64: 2, 2>, scalar_prefetch = 0 : i64, scratch_operands = 0 : i64, tpu.core_type = #tpu.core_type<tc>, window_params = [{transform_indices = @transform_0, window_bounds = array<i64: 1, 4, 128>}, {pipeline_mode = #tpu.pipeline_mode<synchronous>, transform_indices = @transform_1, window_bounds = array<i64: 16, 4>}, {pipeline_mode = #tpu.pipeline_mode<synchronous>, transform_indices = @transform_2, window_bounds = array<i64: 16, 1>}, {transform_indices = @transform_3, window_bounds = array<i64: 1, 16, 128>}]} {
    %c0 = arith.constant 0 : index
    %c0_0 = arith.constant 0 : index
    %0 = vector.load %arg3[%c0, %c0_0] : memref<16x4xf32, #tpu.memory_space<vmem>>, vector<16x4xf32>
    %c0_1 = arith.constant 0 : index
    %c0_2 = arith.constant 0 : index
    %c0_3 = arith.constant 0 : index
    %1 = vector.load %arg2[%c0_1, %c0_2, %c0_3] : memref<1x4x128xf32, #tpu.memory_space<vmem>>, vector<1x4x128xf32>
    %2 = vector.shape_cast %1 : vector<1x4x128xf32> to vector<4x128xf32>
    %cst = arith.constant dense<0.000000e+00> : vector<16x128xf32>
    %3 = tpu.matmul %0, %2, %cst {dimension_numbers = #tpu.dot_dimension_numbers<[1], [0], [0], [1], [0, 0, 1, 1], [], []>} : vector<16x4xf32>, vector<4x128xf32>, vector<16x128xf32> -> vector<16x128xf32>
    %c0_4 = arith.constant 0 : index
    %c0_5 = arith.constant 0 : index
    %4 = vector.load %arg4[%c0_4, %c0_5] : memref<16x1xf32, #tpu.memory_space<vmem>>, vector<16x1xf32>
    %5 = vector.broadcast %4 : vector<16x1xf32> to vector<16x128xf32>
    %6 = arith.addf %3, %5 : vector<16x128xf32>
    %c0_6 = arith.constant 0 : index
    %c0_7 = arith.constant 0 : index
    %c0_8 = arith.constant 0 : index
    %7 = vector.load %arg5[%c0_6, %c0_7, %c0_8] : memref<1x16x128xf32, #tpu.memory_space<vmem>>, vector<1x16x128xf32>
    %8 = vector.shape_cast %7 : vector<1x16x128xf32> to vector<16x128xf32>
    %9 = vector.shape_cast %6 : vector<16x128xf32> to vector<1x16x128xf32>
    tpu.vector_store %arg5[%c0_6, %c0_7, %c0_8], %9 {strides = array<i32>} : memref<1x16x128xf32, #tpu.memory_space<vmem>>, vector<1x16x128xf32>,
    return
  }
  func.func @transform_0(%arg0: i32, %arg1: i32) -> (i32, i32, i32) {
    %c0_i32 = arith.constant 0 : i32
    %c0_i32_0 = arith.constant 0 : i32
    return %arg0, %c0_i32, %arg1 : i32, i32, i32
  }
  func.func @transform_1(%arg0: i32, %arg1: i32) -> (i32, i32) {
    %c0_i32 = arith.constant 0 : i32
    %c0_i32_0 = arith.constant 0 : i32
    %c0_i32_1 = arith.constant 0 : i32
    return %c0_i32, %c0_i32_0 : i32, i32
  }
  func.func @transform_2(%arg0: i32, %arg1: i32) -> (i32, i32) {
    %c0_i32 = arith.constant 0 : i32
    %c0_i32_0 = arith.constant 0 : i32
    %c0_i32_1 = arith.constant 0 : i32
    return %c0_i32, %c0_i32_0 : i32, i32
  }
  func.func @transform_3(%arg0: i32, %arg1: i32) -> (i32, i32, i32) {
    %c0_i32 = arith.constant 0 : i32
    %c0_i32_0 = arith.constant 0 : i32
    return %arg0, %c0_i32, %arg1 : i32, i32, i32
  }
}

</mosaic_0001>

<bundles_post_ra>
// kernel: tpu_custom_call.1
= control target key start
LH: loop header
LB: loop body
LE: loop exit
PB: predicated region body
PF: predicated region fallthrough
CT: control target
= control target key end

     0   :  { %8 = vsyncpa [#allocation4], 0  ;;  %s4741_s0 = inlined_call_operand.vmem [shape: f32[2,4,256], index: 0, kind: input, shape index: {}]   ;;  %s4742_s1 = inlined_call_operand.vmem [shape: f32[16,4], index: 1, kind: input, shape index: {}]   ;;  %s4743_s2 = inlined_call_operand.vmem [shape: f32[16,1], index: 2, kind: input, shape index: {}]   ;;  %s4744_s3 = inlined_call_operand.hbm [shape: f32[2,4,32,32], index: 3, kind: output, shape index: {}]  }
   0x1   :  { %10 = vsyncpa [#allocation4 + $0x1], 0  ;;  %s4179_s12 = smov 0   ;;  %s4181_s13 = smov 0  }
   0x2   :  { %s4183_s14 = smov 0   ;;  %s4185_s15 = smov 0  }
   0x3   :  { %s4187_s16 = smov 0   ;;  %s4189_s17 = smov 0  }
   0x4   :  { %s4191_s18 = smov 0   ;;  %s4193_s19 = smov 0  }
   0x5 LB: > { %s3400_s20 = sadd.s32 4294967295, %s4137_s19   ;;  %s3401_s21 = sadd.s32 4294967294, %s4137_s19   ;;  %s4137_s19 = sphi %s4193_s19, %s16_s19   ;;  %s4133_s18 = sphi %s4191_s18, %s4757_s18   ;;  %s4129_s17 = sphi %s4189_s17, %s4756_s17   ;;  %s4125_s16 = sphi %s4187_s16, %s4755_s16   ;;  %s4121_s15 = sphi %s4185_s15, %s4754_s15   ;;  %s4117_s14 = sphi %s4183_s14, %s4753_s14   ;;  %s4113_s13 = sphi %s4181_s13, %s4752_s13   ;;  %s4109_s12 = sphi %s4179_s12, %s4751_s12  }
   0x6   : > { %s25_s22 = sadd.s32 1, %s4129_s17  ;;  %s28_s23 = sadd.s32 1, %s4133_s18 }
   0x7   : > { %p26_p0 = scmp.ge.s32.totalorder %s25_s22, 2  ;;  %p117_p1 = scmp.ne.s32.totalorder %s4117_s14, %s4113_s13 }
   0x8   : > { %p118_p2 = scmp.eq.s32.totalorder %s3400_s20, 3  ;;  %p123_p5 = scmp.ne.s32.totalorder %s4113_s13, %s4109_s12 }
   0x9   : > { %s4759_s22 = smov (%p26_p0, %s25_s22), 0  ;;  %s4761_s23 = smov (!%p26_p0, %s28_s23), %s4133_s18 }
   0xa   : > { %s103_s24 = ssub.s32 %s4129_s17, %s4759_s22  ;;  %p4230_p3 = por %p118_p2, %p117_p1 }
   0xb   : > { %p30_p4 = scmp.ge.s32.totalorder %s4761_s23, 2  ;;  %p124_p6 = scmp.eq.s32.totalorder %s3401_s21, 3 }
   0xc   : > { %p3404_p7 = scmp.ge.s32.totalorder %s4137_s19, 1  ;;  %p159_p9 = scmp.lt.s32.totalorder %s4137_s19, 5 }
   0xd   : > { %s4763_s23 = smov (%p30_p4, %s4761_s23), 0  ;;  %p4239_p8 = por %p124_p6, %p123_p5 }
   0xe   : > { %s102_s27 = ssub.s32 %s4133_s18, %s4763_s23  ;;  %s107_s28 = sadd.s32 1, %s4117_s14 }
   0xf   : > { %s104_s29 = sor.u32 %s103_s24, %s102_s27  ;;  %p160_p10 = pnand %p3404_p7, %p159_p9 }
  0x10   : > { %p105_p11 = scmp.eq.s32.totalorder %s104_s29, 0  ;;  %p186_p12 = scmp.lt.s32.totalorder (!%p160_p10), %s4125_s16, 1  ;;  %v195_v0 = vld [vmem:[%s4742_s1] sm:$0xff] (!%p160_p10)  ;;  %vm210_vm0 = vcmask (!%p160_p10), 31744   ;;  %v4139_v2 = vmov (!%p160_p10), 0   ;;  %v199_v3 = vld [vmem:[%s4743_s2 + $0x8] sm:$0xff] (!%p160_p10)  ;;  %v298_v6 = vlaneseq (!%p160_p10) }
  0x11   : > { %163 = sbr.rel (%p160_p10) target bundleno = 687 (0x2af), region = 32  ;;  %p188_p13 = scmp.lt.s32.totalorder (!%p160_p10), %s4121_s15, 1  ;;  %3618 = vmatprep.mubr.msk.f32.mxu0 (!%p160_p10), %vm210_vm0, %v195_v0  ;;  %v198_v1 = vld [vmem:[%s4743_s2] sm:$0xff] (!%p160_p10)  ;;  %4070 = vset.pattern.permute.xlu0 (!%p160_p10), %v4139_v2  ;;  %vm217_vm1 = vcmask (!%p160_p10), 1043456   ;;  %v196_v5 = vld [vmem:[%s4742_s1 + $0x8] sm:$0xff] (!%p160_p10)  ;;  %v4140_v14 = vmov (!%p160_p10), 0.0|0.0  }
  0x12   : > { %s4248_s30 = scalar_select %p105_p11, %s4117_s14, %s107_s28  }
  0x13   : > { %202 = vperm.xlu0 (!%p160_p10), %4070, %v198_v1   ;;  %v4271_v7 = vshrl.u32 (!%p160_p10), %v298_v6, 7  ;;  %v302_v11 = vand.u32 (!%p160_p10), 127, %v298_v6  ;;  %3845 = vmatprep.subr.bf16.mxu1 (!%p160_p10), %v4140_v14  ;;  %vm4141_vm4 = vmmov (!%p160_p10), 0   ;;  %v4142_v15 = vmov (!%p160_p10), 0.0   ;;  %s4144_s6 = smov (!%p160_p10), 112   ;;  %s4145_s7 = smov (!%p160_p10), 96  }
  0x14   : > { %3625 = vmatprep.mubr.msk.f32.mxu1 (!%p160_p10), %vm4141_vm4, %v4142_v15  ;;  %v4143_v17 = vmov (!%p160_p10), 1.0|1.0   ;;  %vm321_vm9 = vcmask (!%p160_p10), 130048   ;;  %s4149_s11 = smov (!%p160_p10), 32   ;;  %s4150_s20 = smov (!%p160_p10), 16   ;;  %vm497_vm10 = vcmask (!%p160_p10), 253952  }
  0x15   : > { %v300_v8 = vadd.s32 (!%p160_p10), 8, %v4271_v7  ;;  %v303_v9 = vmul.u32 (!%p160_p10), 2, %v4271_v7 }
  0x17   : > { %207 = vperm.xlu0 (!%p160_p10), %4070, %v199_v3   ;;  %v304_v10 = vmul.u32 (!%p160_p10), 2, %v300_v8  ;;  %v311_v12 = vadd.s32 (!%p160_p10), 1, %v303_v9  ;;  %vm305_vm6 = vcmp.eq.s32.totalorder (!%p160_p10), %v302_v11, %v303_v9 }
  0x18   : > { %s187_s8 = scalar_select %p186_p12, %s4125_s16, 1 }
  0x19   : > { %s189_s9 = scalar_select %p188_p13, %s4121_s15, 1  ;;  %v312_v13 = vadd.s32 1, %v304_v10  ;;  %vm313_vm2 = vcmp.eq.s32.totalorder %v302_v11, %v311_v12  ;;  %vm306_vm7 = vcmp.eq.s32.totalorder %v302_v11, %v304_v10 }
  0x1a   : > { %s3406_s10 = sshll.u32 %s187_s8, 1  ;;  %vm4293_vm8 = vmpackc.low %vm306_vm7, %vm305_vm6  ;;  %s4146_s8 = smov 80  }
  0x1b   : > { %s191_s21 = sadd.s32 %s3406_s10, %s189_s9  ;;  %vm314_vm3 = vcmp.eq.s32.totalorder %v302_v11, %v312_v13  ;;  %s4147_s9 = smov 64  }
  0x1c   : > { %s3407_s24 = sshll.u32 %s191_s21, 2  ;;  %vm4281_vm5 = vmpackc.low %vm314_vm3, %vm313_vm2  ;;  %s4148_s10 = smov 48  }
  0x1d   : > { %s193_s29 = scalar_lea.vmem %s4741_s0, %s3407_s24  ;;  %3847 = vmatpush3.bf16.msk.msra.mxu1 %vm4281_vm5, %v4143_v17  ;;  %s183_s21 = sand.u32 1, %s4113_s13  }
  0x1e   : > { %v197_v4 = vld [vmem:[%s193_s29] sm:$0xf]  ;;  %3848 = vmatprep.subr.bf16.mxu1 %v4140_v14  ;;  %s3405_s24 = sshll.u32 %s183_s21, 6  ;;  %s3274_s28 = scalar_lea.sflag [#allocation4], %s183_s21 }
  0x1f   : > { %3616 = vmatprep.subr.msk.mxu0 %vm217_vm1, %v197_v4  ;;  %s4517_s27 = scalar_lea.vmem [#allocation3], %s3405_s24 }
  0x20   : > { %3617 = vmatpush3.msk.msra.mxu0 %vm217_vm1, %v197_v4 }
  0x21   : > { %3619 = vmatmul.mubr.msk.f32.vlgmr.msra.gmra.mrb[0].mxu0 %vm210_vm0, %v196_v5  ;;  %3851 = vmatprep.subr.bf16.mxu0 %v4140_v14 }
  0x22   : > { %3639 = vmatprep.mubr.msk.f32.mxu0 %vm4141_vm4, %v4142_v15  ;;  %3853 = vmatpush3.bf16.msk.msra.mxu0 %vm4281_vm5, %v4143_v17 }
  0x23   : > { %3854 = vmatprep.subr.bf16.mxu0 %v4140_v14 }
  0x92   : > { %v203_v19 = vpop.permute.xlu0 %202 }
  0x96   : > { %v208_v20 = vpop.permute.xlu0 %207 }
  0xf4   : > { %v3620_v21 = vpop.f32.mrb[0].mxu0 }
  0xf5   : > { %v293_v22 = vadd.f32 %v3620_v21, %v208_v20  ;;  %v287_v23 = vpop.f32.mrb[1].mxu0 }
  0xf6   : > { %v288_v24 = vadd.f32 %v287_v23, %v203_v19 }
  0xf7   : > { %297 = vst [vmem:[#allocation2 + $0x8] sm:$0xff] %v293_v22 }
  0xf8   : > { %296 = vst [vmem:[#allocation2] sm:$0xff] %v288_v24 }
  0xfe   : > { %v503_v25 = vld [vmem:[#allocation2 + $0xc] sm:$0xf]  ;;  %v502_v31 = vld [vmem:[#allocation2 + $0x8] sm:$0xf] }
  0xff   : > { %3640 = vmatmul.mubr.msk.f32.vlgmr.msra.gmra.mrb[2].mxu0 %vm321_vm9, %v503_v25  ;;  %v684_v26 = vld [vmem:[#allocation2 + $0x4] sm:$0xf]  ;;  %v683_v27 = vld [vmem:[#allocation2] sm:$0xf]  ;;  %v869_v29 = vld [vmem:[#allocation2 + $0xc] sm:$0xf] }
 0x100   : > { %v320_v28 = vld [vmem:[#allocation2 + $0x4] sm:$0xf]  ;;  %686 = vrot.lane.b32.xlu1 %v684_v26, %s4144_s6  ;;  %761 = vrot.lane.b32.xlu0 %v683_v27, %s4144_s6  ;;  %v868_v32 = vld [vmem:[#allocation2 + $0x8] sm:$0xf]  ;;  %v1053_v33 = vld [vmem:[#allocation2] sm:$0xf] }
 0x101   : > { %3626 = vmatmul.mubr.msk.f32.vlgmr.msra.gmra.mrb[0].mxu1 %vm321_vm9, %v320_v28  ;;  %3856 = vmatpush3.bf16.msk.msra.mxu0 %vm4293_vm8, %v4143_v17  ;;  %v1054_v30 = vld [vmem:[#allocation2 + $0x4] sm:$0xf]  ;;  %v319_v34 = vld [vmem:[#allocation2] sm:$0xf]  ;;  %v1239_v35 = vld [vmem:[#allocation2 + $0xc] sm:$0xf] }
 0x102   : > { %3850 = vmatpush3.bf16.msk.msra.mxu1 %vm4293_vm8, %v4143_v17  ;;  %3646 = vmatprep.mubr.msk.f32.mxu0 %vm4141_vm4, %v4142_v15  ;;  %v1424_v36 = vld [vmem:[#allocation2 + $0x4] sm:$0xf]  ;;  %v1238_v37 = vld [vmem:[#allocation2 + $0x8] sm:$0xf]  ;;  %v1423_v38 = vld [vmem:[#allocation2] sm:$0xf] }
 0x103   : > { %3632 = vmatprep.mubr.msk.f32.mxu1 %vm4141_vm4, %v4142_v15  ;;  %3857 = vmatprep.subr.bf16.mxu1 %v4140_v14  ;;  %v1609_v39 = vld [vmem:[#allocation2 + $0xc] sm:$0xf]  ;;  %v1794_v40 = vld [vmem:[#allocation2 + $0x4] sm:$0xf]  ;;  %v1608_v41 = vld [vmem:[#allocation2 + $0x8] sm:$0xf] }
 0x104   : > { %871 = vrot.lane.b32.xlu1 %v869_v29, %s4144_s6  ;;  %1056 = vrot.lane.b32.xlu0 %v1054_v30, %s4145_s7  ;;  %v1793_v42 = vld [vmem:[#allocation2] sm:$0xf]  ;;  %v1979_v43 = vld [vmem:[#allocation2 + $0xc] sm:$0xf]  ;;  %v2164_v44 = vld [vmem:[#allocation2 + $0x4] sm:$0xf] }
 0x105   : > { %3863 = vmatprep.subr.bf16.mxu0 %v4140_v14  ;;  %v1978_v45 = vld [vmem:[#allocation2 + $0x8] sm:$0xf]  ;;  %v2163_v46 = vld [vmem:[#allocation2] sm:$0xf]  ;;  %v2349_v47 = vld [vmem:[#allocation2 + $0xc] sm:$0xf] }
 0x106   : > { %v2534_v48 = vld [vmem:[#allocation2 + $0x4] sm:$0xf]  ;;  %v2348_v49 = vld [vmem:[#allocation2 + $0x8] sm:$0xf]  ;;  %v2533_v50 = vld [vmem:[#allocation2] sm:$0xf] }
 0x107   : > { %3647 = vmatmul.mubr.msk.f32.vlgmr.msra.gmra.mrb[2].mxu0 %vm321_vm9, %v502_v31  ;;  %v2719_v51 = vld [vmem:[#allocation2 + $0xc] sm:$0xf]  ;;  %v2904_v52 = vld [vmem:[#allocation2 + $0x4] sm:$0xf]  ;;  %v2718_v53 = vld [vmem:[#allocation2 + $0x8] sm:$0xf] }
 0x108   : > { %946 = vrot.lane.b32.xlu1 %v868_v32, %s4144_s6  ;;  %1131 = vrot.lane.b32.xlu0 %v1053_v33, %s4145_s7  ;;  %v2903_v54 = vld [vmem:[#allocation2] sm:$0xf]  ;;  %v3089_v55 = vld [vmem:[#allocation2 + $0xc] sm:$0xf]  ;;  %v3088_v56 = vld [vmem:[#allocation2 + $0x8] sm:$0xf] }
 0x109   : > { %3633 = vmatmul.mubr.msk.f32.vlgmr.msra.gmra.mrb[0].mxu1 %vm321_vm9, %v319_v34  ;;  %3865 = vmatpush3.bf16.msk.msra.mxu0 %vm4281_vm5, %v4143_v17  ;;  %v4151_v25 = vmov 1966171168  }
 0x10a   : > { %3859 = vmatpush3.bf16.msk.msra.mxu1 %vm4281_vm5, %v4143_v17  ;;  %3653 = vmatprep.mubr.msk.f32.mxu1 %vm4141_vm4, %v4142_v15  ;;  %v470_v26 = vunpack.c.l.s4 %v4151_v25 }
 0x10b   : > { %3667 = vmatprep.mubr.msk.f32.mxu0 %vm4141_vm4, %v4142_v15  ;;  %3866 = vmatprep.subr.bf16.mxu0 %v4140_v14 }
 0x10c   : > { %1241 = vrot.lane.b32.xlu1 %v1239_v35, %s4145_s7  ;;  %1426 = vrot.lane.b32.xlu0 %v1424_v36, %s4146_s8  ;;  %v471_v27 = vunpack.c.0.s8 %v470_v26 }
 0x10d   : > { %3860 = vmatprep.subr.bf16.mxu1 %v4140_v14 }
 0x10e   : > { %v4509_v28 = vsub.s32 %v471_v27, %v4271_v7 }
 0x110   : > { %1316 = vrot.lane.b32.xlu1 %v1238_v37, %s4145_s7  ;;  %1501 = vrot.lane.b32.xlu0 %v1423_v38, %s4146_s8 }
 0x114   : > { %1611 = vrot.lane.b32.xlu1 %v1609_v39, %s4146_s8  ;;  %1796 = vrot.lane.b32.xlu0 %v1794_v40, %s4147_s9 }
 0x118   : > { %1686 = vrot.lane.b32.xlu1 %v1608_v41, %s4146_s8  ;;  %1871 = vrot.lane.b32.xlu0 %v1793_v42, %s4147_s9 }
 0x11c   : > { %1981 = vrot.lane.b32.xlu1 %v1979_v43, %s4147_s9  ;;  %2166 = vrot.lane.b32.xlu0 %v2164_v44, %s4148_s10 }
 0x120   : > { %2056 = vrot.lane.b32.xlu1 %v1978_v45, %s4147_s9  ;;  %2241 = vrot.lane.b32.xlu0 %v2163_v46, %s4148_s10 }
 0x124   : > { %2351 = vrot.lane.b32.xlu1 %v2349_v47, %s4148_s10  ;;  %2536 = vrot.lane.b32.xlu0 %v2534_v48, %s4149_s11 }
 0x128   : > { %2426 = vrot.lane.b32.xlu1 %v2348_v49, %s4148_s10  ;;  %2611 = vrot.lane.b32.xlu0 %v2533_v50, %s4149_s11 }
 0x12c   : > { %2721 = vrot.lane.b32.xlu1 %v2719_v51, %s4149_s11  ;;  %2906 = vrot.lane.b32.xlu0 %v2904_v52, %s4150_s20 }
 0x130   : > { %2796 = vrot.lane.b32.xlu1 %v2718_v53, %s4149_s11  ;;  %2981 = vrot.lane.b32.xlu0 %v2903_v54, %s4150_s20 }
 0x134   : > { %3091 = vrot.lane.b32.xlu1 %v3089_v55, %s4150_s20 }
 0x138   : > { %3166 = vrot.lane.b32.xlu1 %v3088_v56, %s4150_s20 }
 0x172   : > { %v687_v57 = vpop.permute.xlu1 %686  ;;  %v762_v59 = vpop.permute.xlu0 %761 }
 0x173   : > { %3654 = vmatmul.mubr.msk.f32.vlgmr.msra.gmra.mrb[2].mxu1 %vm321_vm9, %v687_v57 }
 0x174   : > { %3862 = vmatpush3.bf16.msk.msra.mxu1 %vm4293_vm8, %v4143_v17  ;;  %3660 = vmatprep.mubr.msk.f32.mxu1 %vm4141_vm4, %v4142_v15 }
 0x175   : > { %3869 = vmatprep.subr.bf16.mxu1 %v4140_v14 }
 0x176   : > { %v872_v58 = vpop.permute.xlu1 %871  ;;  %v1057_v61 = vpop.permute.xlu0 %1056 }
 0x177   : > { %3668 = vmatmul.mubr.msk.f32.vlgmr.msra.gmra.mrb[4].mxu0 %vm321_vm9, %v872_v58 }
 0x178   : > { %3868 = vmatpush3.bf16.msk.msra.mxu0 %vm4293_vm8, %v4143_v17  ;;  %3674 = vmatprep.mubr.msk.f32.mxu0 %vm4141_vm4, %v4142_v15 }
 0x179   : > { %3875 = vmatprep.subr.bf16.mxu0 %v4140_v14 }
 0x17a   : > { %v947_v60 = vpop.permute.xlu1 %946  ;;  %v1132_v63 = vpop.permute.xlu0 %1131 }
 0x17b   : > { %3661 = vmatmul.mubr.msk.f32.vlgmr.msra.gmra.mrb[2].mxu1 %vm321_vm9, %v762_v59 }
 0x17c   : > { %3871 = vmatpush3.bf16.msk.msra.mxu1 %vm4281_vm5, %v4143_v17  ;;  %3681 = vmatprep.mubr.msk.f32.mxu1 %vm4141_vm4, %v4142_v15 }
 0x17d   : > { %3872 = vmatprep.subr.bf16.mxu1 %v4140_v14 }
 0x17e   : > { %v1242_v62 = vpop.permute.xlu1 %1241  ;;  %v1427_v1 = vpop.permute.xlu0 %1426 }
 0x17f   : > { %3675 = vmatmul.mubr.msk.f32.vlgmr.msra.gmra.mrb[4].mxu0 %vm321_vm9, %v947_v60  ;;  %3682 = vmatmul.mubr.msk.f32.vlgmr.msra.gmra.mrb[4].mxu1 %vm321_vm9, %v1057_v61 }
 0x180   : > { %3877 = vmatpush3.bf16.msk.msra.mxu0 %vm4281_vm5, %v4143_v17  ;;  %3695 = vmatprep.mubr.msk.f32.mxu0 %vm4141_vm4, %v4142_v15 }
 0x181   : > { %3878 = vmatprep.subr.bf16.mxu0 %v4140_v14  ;;  %3874 = vmatpush3.bf16.msk.msra.mxu1 %vm4293_vm8, %v4143_v17 }
 0x182   : > { %3688 = vmatprep.mubr.msk.f32.mxu1 %vm4141_vm4, %v4142_v15  ;;  %3881 = vmatprep.subr.bf16.mxu1 %v4140_v14  ;;  %v1317_v0 = vpop.permute.xlu1 %1316  ;;  %v1502_v3 = vpop.permute.xlu0 %1501 }
 0x183   : > { %3696 = vmatmul.mubr.msk.f32.vlgmr.msra.gmra.mrb[6].mxu0 %vm321_vm9, %v1242_v62 }
 0x184   : > { %3880 = vmatpush3.bf16.msk.msra.mxu0 %vm4293_vm8, %v4143_v17  ;;  %3702 = vmatprep.mubr.msk.f32.mxu0 %vm4141_vm4, %v4142_v15 }
 0x185   : > { %3887 = vmatprep.subr.bf16.mxu0 %v4140_v14 }
 0x186   : > { %v1612_v2 = vpop.permute.xlu1 %1611  ;;  %v1797_v5 = vpop.permute.xlu0 %1796 }
 0x187   : > { %3689 = vmatmul.mubr.msk.f32.vlgmr.msra.gmra.mrb[4].mxu1 %vm321_vm9, %v1132_v63 }
 0x188   : > { %3883 = vmatpush3.bf16.msk.msra.mxu1 %vm4281_vm5, %v4143_v17  ;;  %3709 = vmatprep.mubr.msk.f32.mxu1 %vm4141_vm4, %v4142_v15 }
 0x189   : > { %3884 = vmatprep.subr.bf16.mxu1 %v4140_v14 }
 0x18a   : > { %v1687_v4 = vpop.permute.xlu1 %1686  ;;  %v1872_v8 = vpop.permute.xlu0 %1871 }
 0x18b   : > { %3703 = vmatmul.mubr.msk.f32.vlgmr.msra.gmra.mrb[6].mxu0 %vm321_vm9, %v1317_v0  ;;  %3710 = vmatmul.mubr.msk.f32.vlgmr.msra.gmra.mrb[6].mxu1 %vm321_vm9, %v1427_v1 }
 0x18c   : > { %3889 = vmatpush3.bf16.msk.msra.mxu0 %vm4281_vm5, %v4143_v17  ;;  %3723 = vmatprep.mubr.msk.f32.mxu0 %vm4141_vm4, %v4142_v15 }
 0x18d   : > { %3890 = vmatprep.subr.bf16.mxu0 %v4140_v14  ;;  %3886 = vmatpush3.bf16.msk.msra.mxu1 %vm4293_vm8, %v4143_v17 }
 0x18e   : > { %3716 = vmatprep.mubr.msk.f32.mxu1 %vm4141_vm4, %v4142_v15  ;;  %3893 = vmatprep.subr.bf16.mxu1 %v4140_v14  ;;  %v1982_v6 = vpop.permute.xlu1 %1981  ;;  %v2167_v10 = vpop.permute.xlu0 %2166 }
 0x18f   : > { %3724 = vmatmul.mubr.msk.f32.vlgmr.msra.gmra.mrb[8].mxu0 %vm321_vm9, %v1612_v2 }
 0x190   : > { %3892 = vmatpush3.bf16.msk.msra.mxu0 %vm4293_vm8, %v4143_v17  ;;  %3730 = vmatprep.mubr.msk.f32.mxu0 %vm4141_vm4, %v4142_v15 }
 0x191   : > { %3899 = vmatprep.subr.bf16.mxu0 %v4140_v14 }
 0x192   : > { %v2057_v9 = vpop.permute.xlu1 %2056  ;;  %v2242_v12 = vpop.permute.xlu0 %2241 }
 0x193   : > { %3717 = vmatmul.mubr.msk.f32.vlgmr.msra.gmra.mrb[6].mxu1 %vm321_vm9, %v1502_v3 }
 0x194   : > { %3895 = vmatpush3.bf16.msk.msra.mxu1 %vm4281_vm5, %v4143_v17  ;;  %3737 = vmatprep.mubr.msk.f32.mxu1 %vm4141_vm4, %v4142_v15 }
 0x195   : > { %3896 = vmatprep.subr.bf16.mxu1 %v4140_v14 }
 0x196   : > { %v2352_v11 = vpop.permute.xlu1 %2351  ;;  %v2537_v19 = vpop.permute.xlu0 %2536 }
 0x197   : > { %3731 = vmatmul.mubr.msk.f32.vlgmr.msra.gmra.mrb[8].mxu0 %vm321_vm9, %v1687_v4  ;;  %3738 = vmatmul.mubr.msk.f32.vlgmr.msra.gmra.mrb[8].mxu1 %vm321_vm9, %v1797_v5 }
 0x198   : > { %3901 = vmatpush3.bf16.msk.msra.mxu0 %vm4281_vm5, %v4143_v17  ;;  %3751 = vmatprep.mubr.msk.f32.mxu0 %vm4141_vm4, %v4142_v15 }
 0x199   : > { %3902 = vmatprep.subr.bf16.mxu0 %v4140_v14  ;;  %3898 = vmatpush3.bf16.msk.msra.mxu1 %vm4293_vm8, %v4143_v17 }
 0x19a   : > { %3744 = vmatprep.mubr.msk.f32.mxu1 %vm4141_vm4, %v4142_v15  ;;  %3905 = vmatprep.subr.bf16.mxu1 %v4140_v14  ;;  %v2427_v13 = vpop.permute.xlu1 %2426  ;;  %v2612_v21 = vpop.permute.xlu0 %2611 }
 0x19b   : > { %3752 = vmatmul.mubr.msk.f32.vlgmr.msra.gmra.mrb[10].mxu0 %vm321_vm9, %v1982_v6 }
 0x19c   : > { %3904 = vmatpush3.bf16.msk.msra.mxu0 %vm4293_vm8, %v4143_v17  ;;  %3758 = vmatprep.mubr.msk.f32.mxu0 %vm4141_vm4, %v4142_v15 }
 0x19d   : > { %3911 = vmatprep.subr.bf16.mxu0 %v4140_v14 }
 0x19e   : > { %v2722_v20 = vpop.permute.xlu1 %2721  ;;  %v2907_v23 = vpop.permute.xlu0 %2906 }
 0x19f   : > { %3745 = vmatmul.mubr.msk.f32.vlgmr.msra.gmra.mrb[8].mxu1 %vm321_vm9, %v1872_v8 }
 0x1a0   : > { %3907 = vmatpush3.bf16.msk.msra.mxu1 %vm4281_vm5, %v4143_v17  ;;  %3765 = vmatprep.mubr.msk.f32.mxu1 %vm4141_vm4, %v4142_v15 }
 0x1a1   : > { %3908 = vmatprep.subr.bf16.mxu1 %v4140_v14 }
 0x1a2   : > { %v2797_v22 = vpop.permute.xlu1 %2796  ;;  %v2982_v16 = vpop.permute.xlu0 %2981 }
 0x1a3   : > { %3759 = vmatmul.mubr.msk.f32.vlgmr.msra.gmra.mrb[10].mxu0 %vm321_vm9, %v2057_v9  ;;  %3766 = vmatmul.mubr.msk.f32.vlgmr.msra.gmra.mrb[10].mxu1 %vm321_vm9, %v2167_v10 }
 0x1a4   : > { %3913 = vmatpush3.bf16.msk.msra.mxu0 %vm4281_vm5, %v4143_v17  ;;  %3779 = vmatprep.mubr.msk.f32.mxu0 %vm4141_vm4, %v4142_v15 }
 0x1a5   : > { %3914 = vmatprep.subr.bf16.mxu0 %v4140_v14  ;;  %3910 = vmatpush3.bf16.msk.msra.mxu1 %vm4293_vm8, %v4143_v17 }
 0x1a6   : > { %3772 = vmatprep.mubr.msk.f32.mxu1 %vm4141_vm4, %v4142_v15  ;;  %3917 = vmatprep.subr.bf16.mxu1 %v4140_v14  ;;  %v3092_v24 = vpop.permute.xlu1 %3091 }
 0x1a7   : > { %3780 = vmatmul.mubr.msk.f32.vlgmr.msra.gmra.mrb[12].mxu0 %vm321_vm9, %v2352_v11 }
 0x1a8   : > { %3916 = vmatpush3.bf16.msk.msra.mxu0 %vm4293_vm8, %v4143_v17  ;;  %3786 = vmatprep.mubr.msk.f32.mxu0 %vm4141_vm4, %v4142_v15 }
 0x1a9   : > { %3923 = vmatprep.subr.bf16.mxu0 %v4140_v14 }
 0x1ab   : > { %3773 = vmatmul.mubr.msk.f32.vlgmr.msra.gmra.mrb[10].mxu1 %vm321_vm9, %v2242_v12 }
 0x1ac   : > { %3919 = vmatpush3.bf16.msk.msra.mxu1 %vm4281_vm5, %v4143_v17  ;;  %3793 = vmatprep.mubr.msk.f32.mxu1 %vm4141_vm4, %v4142_v15 }
 0x1ad   : > { %3920 = vmatprep.subr.bf16.mxu1 %v4140_v14 }
 0x1af   : > { %3787 = vmatmul.mubr.msk.f32.vlgmr.msra.gmra.mrb[12].mxu0 %vm321_vm9, %v2427_v13  ;;  %3794 = vmatmul.mubr.msk.f32.vlgmr.msra.gmra.mrb[12].mxu1 %vm321_vm9, %v2537_v19 }
 0x1b0   : > { %3925 = vmatpush3.bf16.msk.msra.mxu0 %vm4281_vm5, %v4143_v17  ;;  %3807 = vmatprep.mubr.msk.f32.mxu0 %vm4141_vm4, %v4142_v15 }
 0x1b1   : > { %3926 = vmatprep.subr.bf16.mxu0 %v4140_v14  ;;  %3922 = vmatpush3.bf16.msk.msra.mxu1 %vm4293_vm8, %v4143_v17 }
 0x1b2   : > { %3800 = vmatprep.mubr.msk.f32.mxu1 %vm4141_vm4, %v4142_v15  ;;  %3929 = vmatprep.subr.bf16.mxu1 %v4140_v14 }
 0x1b3   : > { %3808 = vmatmul.mubr.msk.f32.vlgmr.msra.gmra.mrb[14].mxu0 %vm321_vm9, %v2722_v20 }
 0x1b4   : > { %3928 = vmatpush3.bf16.msk.msra.mxu0 %vm4293_vm8, %v4143_v17  ;;  %3814 = vmatprep.mubr.msk.f32.mxu0 %vm4141_vm4, %v4142_v15 }
 0x1b5   : > { %3935 = vmatprep.subr.bf16.mxu0 %v4140_v14 }
 0x1b7   : > { %3801 = vmatmul.mubr.msk.f32.vlgmr.msra.gmra.mrb[12].mxu1 %vm321_vm9, %v2612_v21 }
 0x1b8   : > { %3931 = vmatpush3.bf16.msk.msra.mxu1 %vm4281_vm5, %v4143_v17  ;;  %3821 = vmatprep.mubr.msk.f32.mxu1 %vm4141_vm4, %v4142_v15 }
 0x1b9   : > { %3932 = vmatprep.subr.bf16.mxu1 %v4140_v14 }
 0x1bb   : > { %3815 = vmatmul.mubr.msk.f32.vlgmr.msra.gmra.mrb[14].mxu0 %vm321_vm9, %v2797_v22  ;;  %3822 = vmatmul.mubr.msk.f32.vlgmr.msra.gmra.mrb[14].mxu1 %vm321_vm9, %v2907_v23 }
 0x1bc   : > { %3937 = vmatpush3.bf16.msk.msra.mxu0 %vm4281_vm5, %v4143_v17  ;;  %3835 = vmatprep.mubr.msk.f32.mxu0 %vm4141_vm4, %v4142_v15 }
 0x1bd   : > { %3938 = vmatprep.subr.bf16.mxu0 %v4140_v14  ;;  %3934 = vmatpush3.bf16.msk.msra.mxu1 %vm4293_vm8, %v4143_v17  ;;  %v3167_v14 = vpop.permute.xlu1 %3166 }
 0x1be   : > { %3828 = vmatprep.mubr.msk.f32.mxu1 %vm4141_vm4, %v4142_v15 }
 0x1bf   : > { %3836 = vmatmul.mubr.msk.f32.vlgmr.msra.gmra.mrb[16].mxu0 %vm321_vm9, %v3092_v24 }
 0x1c0   : > { %3940 = vmatpush3.bf16.msk.msra.mxu0 %vm4293_vm8, %v4143_v17  ;;  %3842 = vmatprep.mubr.msk.f32.mxu0 %vm4141_vm4, %v4142_v15 }
 0x1c3   : > { %3829 = vmatmul.mubr.msk.f32.vlgmr.msra.gmra.mrb[14].mxu1 %vm321_vm9, %v2982_v16 }
 0x1c7   : > { %3843 = vmatmul.mubr.msk.f32.vlgmr.msra.gmra.mrb[16].mxu0 %vm321_vm9, %v3167_v14 }
 0x1da   : > { %v646_v29 = vpop.f32.mrb[2].mxu0 }
 0x1db   : > { %v657_v17 = vrot.slane %v646_v29, %v4509_v28  ;;  %v3648_v18 = vpop.f32.mrb[3].mxu0 }
 0x1dc   : > { %v464_v15 = vpop.f32.mrb[0].mxu1 }
 0x1dd   : > { %v658_v30 = vcombine.high %v657_v17, %v657_v17  ;;  %v665_v31 = vrot.slane %v657_v17, %v4509_v28  ;;  %v475_v32 = vrot.slane %v464_v15, %v4509_v28  ;;  %v3634_v33 = vpop.f32.mrb[1].mxu1 }
 0x1df   : > { %v672_v34 = vrot.slane %v658_v30, %v4509_v28  ;;  %v673_v35 = vcombine.high %v665_v31, %v665_v31  ;;  %679 = vst.msk [vmem:[%s4517_s27 + $0x1] sm:$0x1] %vm497_vm10, %v665_v31  ;;  %v476_v7 = vcombine.high %v475_v32, %v475_v32  ;;  %v483_v36 = vrot.slane %v475_v32, %v4509_v28 }
 0x1e1   : > { %v674_v37 = vcombine.high %v672_v34, %v672_v34  ;;  %680 = vst.msk [vmem:[%s4517_s27 + $0x11] sm:$0x1] %vm497_vm10, %v672_v34  ;;  %681 = vst.msk [vmem:[%s4517_s27 + $0x21] sm:$0x1] %vm497_vm10, %v673_v35  ;;  %v490_v38 = vrot.slane %v476_v7, %v4509_v28  ;;  %v491_v39 = vcombine.high %v483_v36, %v483_v36 }
 0x1e2   : > { %498 = vst.msk [vmem:[%s4517_s27] sm:$0x1] %vm497_vm10, %v483_v36 }
 0x1e3   : > { %682 = vst.msk [vmem:[%s4517_s27 + $0x31] sm:$0x1] %vm497_vm10, %v674_v37  ;;  %v492_v40 = vcombine.high %v490_v38, %v490_v38  ;;  %499 = vst.msk [vmem:[%s4517_s27 + $0x10] sm:$0x1] %vm497_vm10, %v490_v38 }
 0x1e4   : > { %500 = vst.msk [vmem:[%s4517_s27 + $0x20] sm:$0x1] %vm497_vm10, %v491_v39 }
 0x1e5   : > { %501 = vst.msk [vmem:[%s4517_s27 + $0x30] sm:$0x1] %vm497_vm10, %v492_v40 }
 0x24e   : > { %v831_v41 = vpop.f32.mrb[2].mxu1 }
 0x24f   : > { %v842_v42 = vrot.slane %v831_v41, %v4509_v28  ;;  %v3662_v43 = vpop.f32.mrb[3].mxu1 }
 0x251   : > { %v843_v44 = vcombine.high %v842_v42, %v842_v42  ;;  %v850_v45 = vrot.slane %v842_v42, %v4509_v28 }
 0x252   : > { %v1016_v46 = vpop.f32.mrb[4].mxu0 }
 0x253   : > { %v857_v47 = vrot.slane %v843_v44, %v4509_v28  ;;  %v858_v48 = vcombine.high %v850_v45, %v850_v45  ;;  %864 = vst.msk [vmem:[%s4517_s27 + $0x2] sm:$0x1] %vm497_vm10, %v850_v45  ;;  %v1027_v49 = vrot.slane %v1016_v46, %v4509_v28  ;;  %v3676_v50 = vpop.f32.mrb[5].mxu0 }
 0x255   : > { %v859_v51 = vcombine.high %v857_v47, %v857_v47  ;;  %865 = vst.msk [vmem:[%s4517_s27 + $0x12] sm:$0x1] %vm497_vm10, %v857_v47  ;;  %866 = vst.msk [vmem:[%s4517_s27 + $0x22] sm:$0x1] %vm497_vm10, %v858_v48  ;;  %v1028_v52 = vcombine.high %v1027_v49, %v1027_v49  ;;  %v1035_v53 = vrot.slane %v1027_v49, %v4509_v28 }
 0x257   : > { %867 = vst.msk [vmem:[%s4517_s27 + $0x32] sm:$0x1] %vm497_vm10, %v859_v51  ;;  %v1042_v54 = vrot.slane %v1028_v52, %v4509_v28  ;;  %v1043_v55 = vcombine.high %v1035_v53, %v1035_v53  ;;  %1049 = vst.msk [vmem:[%s4517_s27 + $0x3] sm:$0x1] %vm497_vm10, %v1035_v53 }
 0x259   : > { %v1044_v56 = vcombine.high %v1042_v54, %v1042_v54  ;;  %1050 = vst.msk [vmem:[%s4517_s27 + $0x13] sm:$0x1] %vm497_vm10, %v1042_v54  ;;  %1051 = vst.msk [vmem:[%s4517_s27 + $0x23] sm:$0x1] %vm497_vm10, %v1043_v55 }
 0x25a   : > { %v1201_v57 = vpop.f32.mrb[4].mxu1 }
 0x25b   : > { %1052 = vst.msk [vmem:[%s4517_s27 + $0x33] sm:$0x1] %vm497_vm10, %v1044_v56  ;;  %v1212_v58 = vrot.slane %v1201_v57, %v4509_v28  ;;  %v3690_v59 = vpop.f32.mrb[5].mxu1 }
 0x25d   : > { %v1213_v60 = vcombine.high %v1212_v58, %v1212_v58  ;;  %v1220_v61 = vrot.slane %v1212_v58, %v4509_v28 }
 0x25e   : > { %v1386_v62 = vpop.f32.mrb[6].mxu0 }
 0x25f   : > { %v1227_v63 = vrot.slane %v1213_v60, %v4509_v28  ;;  %v1228_v0 = vcombine.high %v1220_v61, %v1220_v61  ;;  %1234 = vst.msk [vmem:[%s4517_s27 + $0x4] sm:$0x1] %vm497_vm10, %v1220_v61  ;;  %v1397_v1 = vrot.slane %v1386_v62, %v4509_v28  ;;  %v3704_v2 = vpop.f32.mrb[7].mxu0 }
 0x261   : > { %v1229_v3 = vcombine.high %v1227_v63, %v1227_v63  ;;  %1235 = vst.msk [vmem:[%s4517_s27 + $0x14] sm:$0x1] %vm497_vm10, %v1227_v63  ;;  %1236 = vst.msk [vmem:[%s4517_s27 + $0x24] sm:$0x1] %vm497_vm10, %v1228_v0  ;;  %v1398_v4 = vcombine.high %v1397_v1, %v1397_v1  ;;  %v1405_v5 = vrot.slane %v1397_v1, %v4509_v28 }
 0x263   : > { %1237 = vst.msk [vmem:[%s4517_s27 + $0x34] sm:$0x1] %vm497_vm10, %v1229_v3  ;;  %v1412_v6 = vrot.slane %v1398_v4, %v4509_v28  ;;  %v1413_v8 = vcombine.high %v1405_v5, %v1405_v5  ;;  %1419 = vst.msk [vmem:[%s4517_s27 + $0x5] sm:$0x1] %vm497_vm10, %v1405_v5 }
 0x265   : > { %v1414_v9 = vcombine.high %v1412_v6, %v1412_v6  ;;  %1420 = vst.msk [vmem:[%s4517_s27 + $0x15] sm:$0x1] %vm497_vm10, %v1412_v6  ;;  %1421 = vst.msk [vmem:[%s4517_s27 + $0x25] sm:$0x1] %vm497_vm10, %v1413_v8 }
 0x266   : > { %v1571_v10 = vpop.f32.mrb[6].mxu1 }
 0x267   : > { %1422 = vst.msk [vmem:[%s4517_s27 + $0x35] sm:$0x1] %vm497_vm10, %v1414_v9  ;;  %v1582_v11 = vrot.slane %v1571_v10, %v4509_v28  ;;  %v3718_v12 = vpop.f32.mrb[7].mxu1 }
 0x269   : > { %v1583_v13 = vcombine.high %v1582_v11, %v1582_v11  ;;  %v1590_v19 = vrot.slane %v1582_v11, %v4509_v28 }
 0x26a   : > { %v1756_v20 = vpop.f32.mrb[8].mxu0 }
 0x26b   : > { %v1597_v21 = vrot.slane %v1583_v13, %v4509_v28  ;;  %v1598_v22 = vcombine.high %v1590_v19, %v1590_v19  ;;  %1604 = vst.msk [vmem:[%s4517_s27 + $0x6] sm:$0x1] %vm497_vm10, %v1590_v19  ;;  %v1767_v23 = vrot.slane %v1756_v20, %v4509_v28  ;;  %v3732_v24 = vpop.f32.mrb[9].mxu0 }
 0x26d   : > { %v1599_v16 = vcombine.high %v1597_v21, %v1597_v21  ;;  %1605 = vst.msk [vmem:[%s4517_s27 + $0x16] sm:$0x1] %vm497_vm10, %v1597_v21  ;;  %1606 = vst.msk [vmem:[%s4517_s27 + $0x26] sm:$0x1] %vm497_vm10, %v1598_v22  ;;  %v1768_v14 = vcombine.high %v1767_v23, %v1767_v23  ;;  %v1775_v25 = vrot.slane %v1767_v23, %v4509_v28 }
 0x26f   : > { %1607 = vst.msk [vmem:[%s4517_s27 + $0x36] sm:$0x1] %vm497_vm10, %v1599_v16  ;;  %v1782_v26 = vrot.slane %v1768_v14, %v4509_v28  ;;  %v1783_v27 = vcombine.high %v1775_v25, %v1775_v25  ;;  %1789 = vst.msk [vmem:[%s4517_s27 + $0x7] sm:$0x1] %vm497_vm10, %v1775_v25 }
 0x271   : > { %v1784_v29 = vcombine.high %v1782_v26, %v1782_v26  ;;  %1790 = vst.msk [vmem:[%s4517_s27 + $0x17] sm:$0x1] %vm497_vm10, %v1782_v26  ;;  %1791 = vst.msk [vmem:[%s4517_s27 + $0x27] sm:$0x1] %vm497_vm10, %v1783_v27 }
 0x272   : > { %v1941_v17 = vpop.f32.mrb[8].mxu1 }
 0x273   : > { %1792 = vst.msk [vmem:[%s4517_s27 + $0x37] sm:$0x1] %vm497_vm10, %v1784_v29  ;;  %v1952_v18 = vrot.slane %v1941_v17, %v4509_v28  ;;  %v3746_v15 = vpop.f32.mrb[9].mxu1 }
 0x275   : > { %v1953_v30 = vcombine.high %v1952_v18, %v1952_v18  ;;  %v1960_v31 = vrot.slane %v1952_v18, %v4509_v28 }
 0x276   : > { %v2126_v32 = vpop.f32.mrb[10].mxu0 }
 0x277   : > { %v1967_v33 = vrot.slane %v1953_v30, %v4509_v28  ;;  %v1968_v34 = vcombine.high %v1960_v31, %v1960_v31  ;;  %1974 = vst.msk [vmem:[%s4517_s27 + $0x8] sm:$0x1] %vm497_vm10, %v1960_v31  ;;  %v2137_v35 = vrot.slane %v2126_v32, %v4509_v28  ;;  %v3760_v7 = vpop.f32.mrb[11].mxu0 }
 0x279   : > { %v1969_v36 = vcombine.high %v1967_v33, %v1967_v33  ;;  %1975 = vst.msk [vmem:[%s4517_s27 + $0x18] sm:$0x1] %vm497_vm10, %v1967_v33  ;;  %1976 = vst.msk [vmem:[%s4517_s27 + $0x28] sm:$0x1] %vm497_vm10, %v1968_v34  ;;  %v2138_v37 = vcombine.high %v2137_v35, %v2137_v35  ;;  %v2145_v38 = vrot.slane %v2137_v35, %v4509_v28 }
 0x27b   : > { %1977 = vst.msk [vmem:[%s4517_s27 + $0x38] sm:$0x1] %vm497_vm10, %v1969_v36  ;;  %v2152_v39 = vrot.slane %v2138_v37, %v4509_v28  ;;  %v2153_v40 = vcombine.high %v2145_v38, %v2145_v38  ;;  %2159 = vst.msk [vmem:[%s4517_s27 + $0x9] sm:$0x1] %vm497_vm10, %v2145_v38 }
 0x27d   : > { %v2154_v41 = vcombine.high %v2152_v39, %v2152_v39  ;;  %2160 = vst.msk [vmem:[%s4517_s27 + $0x19] sm:$0x1] %vm497_vm10, %v2152_v39  ;;  %2161 = vst.msk [vmem:[%s4517_s27 + $0x29] sm:$0x1] %vm497_vm10, %v2153_v40 }
 0x27e   : > { %v2311_v42 = vpop.f32.mrb[10].mxu1 }
 0x27f   : > { %2162 = vst.msk [vmem:[%s4517_s27 + $0x39] sm:$0x1] %vm497_vm10, %v2154_v41  ;;  %v2322_v43 = vrot.slane %v2311_v42, %v4509_v28  ;;  %v3774_v44 = vpop.f32.mrb[11].mxu1 }
 0x281   : > { %v2323_v45 = vcombine.high %v2322_v43, %v2322_v43  ;;  %v2330_v46 = vrot.slane %v2322_v43, %v4509_v28 }
 0x282   : > { %v2496_v47 = vpop.f32.mrb[12].mxu0 }
 0x283   : > { %v2337_v48 = vrot.slane %v2323_v45, %v4509_v28  ;;  %v2338_v49 = vcombine.high %v2330_v46, %v2330_v46  ;;  %2344 = vst.msk [vmem:[%s4517_s27 + $0xa] sm:$0x1] %vm497_vm10, %v2330_v46  ;;  %v2507_v50 = vrot.slane %v2496_v47, %v4509_v28  ;;  %v3788_v51 = vpop.f32.mrb[13].mxu0 }
 0x285   : > { %v2339_v52 = vcombine.high %v2337_v48, %v2337_v48  ;;  %2345 = vst.msk [vmem:[%s4517_s27 + $0x1a] sm:$0x1] %vm497_vm10, %v2337_v48  ;;  %2346 = vst.msk [vmem:[%s4517_s27 + $0x2a] sm:$0x1] %vm497_vm10, %v2338_v49  ;;  %v2508_v53 = vcombine.high %v2507_v50, %v2507_v50  ;;  %v2515_v54 = vrot.slane %v2507_v50, %v4509_v28 }
 0x287   : > { %2347 = vst.msk [vmem:[%s4517_s27 + $0x3a] sm:$0x1] %vm497_vm10, %v2339_v52  ;;  %v2522_v55 = vrot.slane %v2508_v53, %v4509_v28  ;;  %v2523_v56 = vcombine.high %v2515_v54, %v2515_v54  ;;  %2529 = vst.msk [vmem:[%s4517_s27 + $0xb] sm:$0x1] %vm497_vm10, %v2515_v54 }
 0x289   : > { %v2524_v57 = vcombine.high %v2522_v55, %v2522_v55  ;;  %2530 = vst.msk [vmem:[%s4517_s27 + $0x1b] sm:$0x1] %vm497_vm10, %v2522_v55  ;;  %2531 = vst.msk [vmem:[%s4517_s27 + $0x2b] sm:$0x1] %vm497_vm10, %v2523_v56 }
 0x28a   : > { %v2681_v58 = vpop.f32.mrb[12].mxu1 }
 0x28b   : > { %2532 = vst.msk [vmem:[%s4517_s27 + $0x3b] sm:$0x1] %vm497_vm10, %v2524_v57  ;;  %v2692_v59 = vrot.slane %v2681_v58, %v4509_v28  ;;  %v3802_v60 = vpop.f32.mrb[13].mxu1 }
 0x28d   : > { %v2693_v61 = vcombine.high %v2692_v59, %v2692_v59  ;;  %v2700_v62 = vrot.slane %v2692_v59, %v4509_v28 }
 0x28e   : > { %v2866_v63 = vpop.f32.mrb[14].mxu0 }
 0x28f   : > { %v2707_v0 = vrot.slane %v2693_v61, %v4509_v28  ;;  %v2708_v1 = vcombine.high %v2700_v62, %v2700_v62  ;;  %2714 = vst.msk [vmem:[%s4517_s27 + $0xc] sm:$0x1] %vm497_vm10, %v2700_v62  ;;  %v2877_v2 = vrot.slane %v2866_v63, %v4509_v28  ;;  %v3816_v3 = vpop.f32.mrb[15].mxu0 }
 0x291   : > { %v2709_v4 = vcombine.high %v2707_v0, %v2707_v0  ;;  %2715 = vst.msk [vmem:[%s4517_s27 + $0x1c] sm:$0x1] %vm497_vm10, %v2707_v0  ;;  %2716 = vst.msk [vmem:[%s4517_s27 + $0x2c] sm:$0x1] %vm497_vm10, %v2708_v1  ;;  %v2878_v5 = vcombine.high %v2877_v2, %v2877_v2  ;;  %v2885_v6 = vrot.slane %v2877_v2, %v4509_v28 }
 0x293   : > { %2717 = vst.msk [vmem:[%s4517_s27 + $0x3c] sm:$0x1] %vm497_vm10, %v2709_v4  ;;  %v2892_v8 = vrot.slane %v2878_v5, %v4509_v28  ;;  %v2893_v9 = vcombine.high %v2885_v6, %v2885_v6  ;;  %2899 = vst.msk [vmem:[%s4517_s27 + $0xd] sm:$0x1] %vm497_vm10, %v2885_v6 }
 0x295   : > { %v2894_v10 = vcombine.high %v2892_v8, %v2892_v8  ;;  %2900 = vst.msk [vmem:[%s4517_s27 + $0x1d] sm:$0x1] %vm497_vm10, %v2892_v8  ;;  %2901 = vst.msk [vmem:[%s4517_s27 + $0x2d] sm:$0x1] %vm497_vm10, %v2893_v9 }
 0x296   : > { %v3051_v11 = vpop.f32.mrb[14].mxu1 }
 0x297   : > { %2902 = vst.msk [vmem:[%s4517_s27 + $0x3d] sm:$0x1] %vm497_vm10, %v2894_v10  ;;  %v3062_v12 = vrot.slane %v3051_v11, %v4509_v28  ;;  %v3830_v13 = vpop.f32.mrb[15].mxu1 }
 0x299   : > { %v3063_v19 = vcombine.high %v3062_v12, %v3062_v12  ;;  %v3070_v20 = vrot.slane %v3062_v12, %v4509_v28 }
 0x29a   : > { %v3236_v21 = vpop.f32.mrb[16].mxu0 }
 0x29b   : > { %v3077_v22 = vrot.slane %v3063_v19, %v4509_v28  ;;  %v3078_v23 = vcombine.high %v3070_v20, %v3070_v20  ;;  %3084 = vst.msk [vmem:[%s4517_s27 + $0xe] sm:$0x1] %vm497_vm10, %v3070_v20  ;;  %v3247_v24 = vrot.slane %v3236_v21, %v4509_v28  ;;  %v3844_v16 = vpop.f32.mrb[17].mxu0 }
 0x29d   : > { %v3079_v14 = vcombine.high %v3077_v22, %v3077_v22  ;;  %3085 = vst.msk [vmem:[%s4517_s27 + $0x1e] sm:$0x1] %vm497_vm10, %v3077_v22  ;;  %3086 = vst.msk [vmem:[%s4517_s27 + $0x2e] sm:$0x1] %vm497_vm10, %v3078_v23  ;;  %v3248_v25 = vcombine.high %v3247_v24, %v3247_v24  ;;  %v3255_v26 = vrot.slane %v3247_v24, %v4509_v28 }
 0x29f   : > { %3087 = vst.msk [vmem:[%s4517_s27 + $0x3e] sm:$0x1] %vm497_vm10, %v3079_v14  ;;  %v3262_v27 = vrot.slane %v3248_v25, %v4509_v28  ;;  %v3263_v29 = vcombine.high %v3255_v26, %v3255_v26  ;;  %3269 = vst.msk [vmem:[%s4517_s27 + $0xf] sm:$0x1] %vm497_vm10, %v3255_v26 }
 0x2a1   : > { %v3264_v17 = vcombine.high %v3262_v27, %v3262_v27  ;;  %3270 = vst.msk [vmem:[%s4517_s27 + $0x1f] sm:$0x1] %vm497_vm10, %v3262_v27  ;;  %3271 = vst.msk [vmem:[%s4517_s27 + $0x2f] sm:$0x1] %vm497_vm10, %v3263_v29 }
 0x2a3   : > { %3272 = vst.msk [vmem:[%s4517_s27 + $0x3f] sm:$0x1] %vm497_vm10, %v3264_v17 }
 0x2a4   : > { %s3512_s29 = sshll.u32 %s4121_s15, 1  ;;  %s3513_s4 = sshll.u32 %s4125_s16, 4 }
 0x2a5   : > { %s3286_s5 = sadd.s32 %s3513_s4, %s3512_s29  ;;  %s3305_s6 = sshll.u32 %s4517_s27, 4  ;;  %s3306_s6 = int_to_ptr.vmem [resolvable:$true] %s3305_s6 }
 0x2a6   : > { %s3514_s7 = sshll.u32 %s3286_s5, 7  ;;  %s4152_s11 = smov 256  }
 0x2a7   : > { %s3288_s10 = scalar_lea.hbm %s4744_s3, %s3514_s7  ;;  %3973 = sst [smem:[#allocation6]] (%p4230_p3), %s4152_s11 }
 0x2a8   : > { %s4153_s20 = smov 512   ;;  %s4154_s21 = smov 2  }
 0x2a9   : > { %3974 = sst [smem:[#allocation6 + $0x1]] (%p4230_p3), %s4153_s20  ;;  %s4155_s15 = smov 128  }
 0x2aa   : > { %3975 = sst [smem:[#allocation6 + $0x2]] (%p4230_p3), %s4154_s21  ;;  %s4156_s16 = smov 8  }
 0x2ab   : > { %3976 = sst [smem:[#allocation6 + $0x3]] (%p4230_p3), %s4155_s15  ;;  %s4157_s24 = smov [#allocation5]  }
 0x2ac   : > { %3977 = sst [smem:[#allocation6 + $0x4]] (%p4230_p3), %s4155_s15  ;;  %s4158_s27 = smov 0  }
 0x2ad   : > { %3978 = sst [smem:[#allocation6 + $0x5]] (%p4230_p3), %s4156_s16 }
 0x2ae   : > { %3979 = dma.general (%p4230_p3), %s3306_s6, 1024, %s3288_s10, %s3274_s28, %s4157_s24, [#allocation6], %s4158_s27, 0  }
 0x2af PF: > { %p3985_p0 = scmp.ge.s32.totalorder %s4137_s19, 2  ;;  %s3333_s29 = sand.u32 1, %s4109_s12  }
 0x2b0   : > { %s3334_s4 = scalar_lea.sflag [#allocation4], %s3333_s29 }
 0x2b1   : > { %p3982_p1 = pnand %p3985_p0, %p4239_p8 }
 0x2b3   : > { %4104 = dma.done.wait (!%p3982_p1), %s3334_s4, 1024  }
 0x2b4   : > { %4106 = vsyncadd (!%p3982_p1), %s3334_s4, 4294966272  ;;  %s16_s19 = sadd.s32 1, %s4137_s19   ;;  %s4751_s12 = smov %s4113_s13 }
 0x2b5   : > { %p13_p2 = scmp.ge.s32.totalorder %s16_s19, 6   ;;  %s4752_s13 = smov %s4117_s14 }
 0x2b6   : > { %s4753_s14 = smov %s4248_s30  ;;  %s4754_s15 = smov %s4129_s17 }
 0x2b7   : > { %s4755_s16 = smov %s4133_s18  ;;  %s4756_s17 = smov %s4759_s22 }
 0x2b8   : > { %s4757_s18 = smov %s4763_s23  ;;  %15 = sbr.rel (!%p13_p2) target bundleno = 5 (0x5), region = 72 }
 0x2bf   :  { %3339 = vsyncpa [#allocation4], 1 }
 0x2c0   :  { %3341 = vsyncpa [#allocation4 + $0x1], 1 }

// kernel: tpu_custom_call.1
= control target key start
LH: loop header
LB: loop body
LE: loop exit
PB: predicated region body
PF: predicated region fallthrough
CT: control target
= control target key end

     0   :  { %8 = vsyncpa [#allocation3], 0  ;;  %s768_s0 = inlined_call_operand.vmem [shape: f32[2,4,256], index: 0, kind: input, shape index: {}]   ;;  %s769_s1 = inlined_call_operand.vmem [shape: f32[16,4], index: 1, kind: input, shape index: {}]   ;;  %s770_s2 = inlined_call_operand.vmem [shape: f32[16,1], index: 2, kind: input, shape index: {}]   ;;  %s771_s3 = inlined_call_operand.hbm [shape: f32[2,16,256], index: 3, kind: output, shape index: {}]  }
   0x1   :  { %10 = vsyncpa [#allocation3 + $0x1], 0  ;;  %s614_s12 = smov 0   ;;  %s616_s13 = smov 0  }
   0x2   :  { %s618_s14 = smov 0   ;;  %s620_s15 = smov 0  }
   0x3   :  { %s622_s16 = smov 0   ;;  %s624_s17 = smov 0  }
   0x4   :  { %s626_s18 = smov 0   ;;  %s628_s19 = smov 0  }
   0x5 LB: > { %s393_s20 = sadd.s32 4294967295, %s587_s19   ;;  %s394_s21 = sadd.s32 4294967294, %s587_s19   ;;  %s587_s19 = sphi %s628_s19, %s16_s19   ;;  %s583_s18 = sphi %s626_s18, %s780_s18   ;;  %s579_s17 = sphi %s624_s17, %s779_s17   ;;  %s575_s16 = sphi %s622_s16, %s778_s16   ;;  %s571_s15 = sphi %s620_s15, %s777_s15   ;;  %s567_s14 = sphi %s618_s14, %s776_s14   ;;  %s563_s13 = sphi %s616_s13, %s775_s13   ;;  %s559_s12 = sphi %s614_s12, %s774_s12  }
   0x6   : > { %s25_s22 = sadd.s32 1, %s579_s17  ;;  %s28_s23 = sadd.s32 1, %s583_s18 }
   0x7   : > { %p26_p0 = scmp.ge.s32.totalorder %s25_s22, 2  ;;  %p117_p1 = scmp.ne.s32.totalorder %s567_s14, %s563_s13 }
   0x8   : > { %p118_p2 = scmp.eq.s32.totalorder %s393_s20, 3  ;;  %p123_p5 = scmp.ne.s32.totalorder %s563_s13, %s559_s12 }
   0x9   : > { %s782_s22 = smov (%p26_p0, %s25_s22), 0  ;;  %s784_s23 = smov (!%p26_p0, %s28_s23), %s583_s18 }
   0xa   : > { %s103_s24 = ssub.s32 %s579_s17, %s782_s22  ;;  %p665_p3 = por %p118_p2, %p117_p1 }
   0xb   : > { %p30_p4 = scmp.ge.s32.totalorder %s784_s23, 2  ;;  %p124_p6 = scmp.eq.s32.totalorder %s394_s21, 3 }
   0xc   : > { %p397_p7 = scmp.ge.s32.totalorder %s587_s19, 1  ;;  %p159_p9 = scmp.lt.s32.totalorder %s587_s19, 5 }
   0xd   : > { %s786_s23 = smov (%p30_p4, %s784_s23), 0  ;;  %p674_p8 = por %p124_p6, %p123_p5 }
   0xe   : > { %s102_s27 = ssub.s32 %s583_s18, %s786_s23  ;;  %s107_s28 = sadd.s32 1, %s567_s14 }
   0xf   : > { %s104_s29 = sor.u32 %s103_s24, %s102_s27  ;;  %p160_p10 = pnand %p397_p7, %p159_p9 }
  0x10   : > { %p105_p11 = scmp.eq.s32.totalorder %s104_s29, 0  ;;  %p186_p12 = scmp.lt.s32.totalorder (!%p160_p10), %s575_s16, 1  ;;  %v194_v0 = vld [vmem:[%s769_s1] sm:$0xff] (!%p160_p10)  ;;  %vm209_vm0 = vcmask (!%p160_p10), 31744   ;;  %v589_v2 = vmov (!%p160_p10), 0   ;;  %v198_v3 = vld [vmem:[%s770_s2 + $0x8] sm:$0xff] (!%p160_p10) }
  0x11   : > { %163 = sbr.rel (%p160_p10) target bundleno = 264 (0x108), region = 32  ;;  %p188_p13 = scmp.lt.s32.totalorder (!%p160_p10), %s571_s15, 1  ;;  %414 = vmatprep.mubr.msk.f32.mxu0 (!%p160_p10), %vm209_vm0, %v194_v0  ;;  %v197_v1 = vld [vmem:[%s770_s2] sm:$0xff] (!%p160_p10)  ;;  %492 = vset.pattern.permute.xlu0 (!%p160_p10), %v589_v2  ;;  %vm216_vm1 = vcmask (!%p160_p10), 1043456   ;;  %v195_v5 = vld [vmem:[%s769_s1 + $0x8] sm:$0xff] (!%p160_p10) }
  0x12   : > { %s683_s30 = scalar_select %p105_p11, %s567_s14, %s107_s28  }
  0x13   : > { %201 = vperm.xlu0 (!%p160_p10), %492, %v197_v1   ;;  %s183_s6 = sand.u32 (!%p160_p10), 1, %s563_s13   ;;  %s590_s28 = smov (!%p160_p10), [#allocation2]  }
  0x14   : > { %s398_s7 = sshll.u32 (!%p160_p10), %s183_s6, 4 }
  0x17   : > { %206 = vperm.xlu0 (!%p160_p10), %492, %v198_v3  }
  0x18   : > { %s187_s8 = scalar_select %p186_p12, %s575_s16, 1 }
  0x19   : > { %s189_s9 = scalar_select %p188_p13, %s571_s15, 1 }
  0x1a   : > { %s399_s10 = sshll.u32 %s187_s8, 1  ;;  %s405_s8 = sshll.u32 %s575_s16, 2 }
  0x1b   : > { %s191_s21 = sadd.s32 %s399_s10, %s189_s9  ;;  %s309_s9 = sadd.s32 %s571_s15, %s405_s8 }
  0x1c   : > { %s400_s24 = sshll.u32 %s191_s21, 2  ;;  %s185_s10 = scalar_lea.vmem [#allocation2], %s398_s7 }
  0x1d   : > { %s193_s29 = scalar_lea.vmem %s768_s0, %s400_s24  ;;  %s312_s11 = sshll.u32 %s185_s10, 4  ;;  %s709_s11 = int_to_ptr.vmem [resolvable:$true] %s312_s11 }
  0x1e   : > { %v196_v4 = vld [vmem:[%s193_s29] sm:$0xf]  ;;  %s406_s20 = sshll.u32 %s309_s9, 7  ;;  %s716_s15 = scalar_lea.sflag [#allocation3], %s183_s6 }
  0x1f   : > { %412 = vmatprep.subr.msk.mxu0 %vm216_vm1, %v196_v4  ;;  %s714_s27 = scalar_lea.hbm %s771_s3, %s406_s20  ;;  %s493_s16 = scalar_lea.vmem %s709_s11, 256 }
  0x20   : > { %413 = vmatpush3.msk.msra.mxu0 %vm216_vm1, %v196_v4  ;;  %p494_p0 = scmp.ne.s32.totalorder %s709_s11, %s493_s16  ;;  %s497_s29 = sshll.u32 %s590_s28, 4  ;;  %s498_s29 = int_to_ptr.vmem [resolvable:$false] %s497_s29 }
  0x21   : > { %415 = vmatmul.mubr.msk.f32.vlgmr.msra.gmra.mrb[0].mxu0 %vm209_vm0, %v195_v5  ;;  %s499_s4 = scalar_lea.vmem %s498_s29, 512  ;;  %p500_p4 = scmp.lt.s32.totalorder %s709_s11, %s498_s29 }
  0x22   : > { %p495_p1 = pnand %p494_p0, %p665_p3  ;;  %p501_p5 = scmp.lt.s32.totalorder %s499_s4, %s493_s16 }
  0x24   : > { %p496_p2 = pneg %p495_p1  ;;  %p502_p6 = por %p501_p5, %p500_p4 }
  0x26   : > { %p503_p7 = pnand %p502_p6, %p496_p2 }
  0x92   : > { %v202_v6 = vpop.permute.xlu0 %201 }
  0x96   : > { %v207_v7 = vpop.permute.xlu0 %206 }
  0xf4   : > { %v416_v8 = vpop.f32.mrb[0].mxu0 }
  0xf5   : > { %v292_v9 = vadd.f32 %v416_v8, %v207_v7  ;;  %v286_v10 = vpop.f32.mrb[1].mxu0 }
  0xf6   : > { %v287_v11 = vadd.f32 %v286_v10, %v202_v6 }
  0xf7   : > { %296 = vst [vmem:[%s185_s10 + $0x8] sm:$0xff] %v292_v9 }
  0xf8   : > { %295 = vst [vmem:[%s185_s10] sm:$0xff] %v287_v11 }
  0xf9   : > { %506 = shalt.err (!%p503_p7)
}
  0xfa   : > { %s507_s5 = scalar_lea.hbm %s714_s27, 256  ;;  %s511_s8 = scalar_lea.hbm %s771_s3, 1024 }
  0xfb   : > { %p508_p9 = scmp.ne.s32.totalorder %s714_s27, %s507_s5  ;;  %p512_p12 = scmp.lt.u32.totalorder %s714_s27, %s771_s3 }
  0xfc   : > { %p513_p13 = scmp.lt.u32.totalorder %s511_s8, %s507_s5  ;;  %p515_p1 = scmp.lt.u32.totalorder %s507_s5, %s714_s27 }
  0xfd   : > { %p509_p10 = pnand %p508_p9, %p665_p3 }
  0xfe   : > { %p514_p0 = por %p513_p13, %p512_p12 }
  0xff   : > { %p510_p11 = pneg %p509_p10 }
 0x100   : > { %p516_p2 = por %p515_p1, %p514_p0 }
 0x102   : > { %p517_p4 = pnand %p516_p2, %p510_p11 }
 0x104   : > { %520 = shalt.err (!%p517_p4)
}
 0x105   : > { %s591_s20 = smov 128   ;;  %s592_s21 = smov 256  }
 0x106   : > { %s593_s24 = smov 8  }
 0x107   : > { %417 = dma.vmem_to_hbm [thread:$0]  (%p665_p3), %s709_s11, 256, %s714_s27, %s716_s15, %s591_s20, %s592_s21, %s593_s24  }
 0x108 PF: > { %p423_p5 = scmp.ge.s32.totalorder %s587_s19, 2  ;;  %s327_s16 = sand.u32 1, %s559_s12  }
 0x109   : > { %s328_s28 = scalar_lea.sflag [#allocation3], %s327_s16 }
 0x10a   : > { %p420_p6 = pnand %p423_p5, %p674_p8 }
 0x10c   : > { %554 = dma.done.wait (!%p420_p6), %s328_s28, 256  }
 0x10d   : > { %556 = vsyncadd (!%p420_p6), %s328_s28, 4294967040  ;;  %s16_s19 = sadd.s32 1, %s587_s19   ;;  %s774_s12 = smov %s563_s13 }
 0x10e   : > { %p13_p7 = scmp.ge.s32.totalorder %s16_s19, 6   ;;  %s775_s13 = smov %s567_s14 }
 0x10f   : > { %s776_s14 = smov %s683_s30  ;;  %s777_s15 = smov %s579_s17 }
 0x110   : > { %s778_s16 = smov %s583_s18  ;;  %s779_s17 = smov %s782_s22 }
 0x111   : > { %s780_s18 = smov %s786_s23  ;;  %15 = sbr.rel (!%p13_p7) target bundleno = 5 (0x5), region = 67 }
 0x118   :  { %333 = vsyncpa [#allocation3], 1 }
 0x119   :  { %335 = vsyncpa [#allocation3 + $0x1], 1 }

</bundles_post_ra>
